<compile_context>
chip_gen: v7x
topology: tpu7x:2x2x1
jax: 0.10.0
libtpu: 0.0.40
codegen_flags: <defaults>
</compile_context>

<pallas_src>
import functools

import jax
import jax.numpy as jnp
from jax.experimental import pallas as pl
from jax.experimental.pallas import tpu as pltpu


def sis_kernel(data_ref, noise_ref, init_state_ref, init_logw_ref, At_ref,
               Ht_ref, sel_ref, out_ref, states_sc, w_sc, *,
               time_extent, n_particles, state_dim, obs_dim):
    T, P, D, Dy = time_extent, n_particles, state_dim, obs_dim

    # --- prior log-weight normalisation (lane-major: one vreg) --------------
    lw0 = init_logw_ref[0]                                    # (1, P)
    m = jnp.max(lw0, axis=1, keepdims=True)
    s = jnp.sum(jnp.exp(lw0 - m), axis=1, keepdims=True)
    logw = lw0 - (m + jnp.log(s))                             # normalised log-weights

    A_t = At_ref[...]                                         # (D, D)  == A^T
    H_t = Ht_ref[...]                                         # (Dy, D) == H^T

    # --- phase 1: serial state recursion (particles in lanes) ---------------
    #   state_t^T = A^T @ state_{t-1}^T + noise_t^T   (== (state @ A + noise)^T)
    state = init_state_ref[0]                                 # (D, P) traced carry
    for t in range(T):
        state = (jnp.dot(A_t, state, preferred_element_type=jnp.float32)
                 + noise_ref[0, :, t * P:(t + 1) * P])
        states_sc[:, t * P:(t + 1) * P] = state               # aligned, unmasked store

    # --- phase 2: bulk observations / log-likelihoods (off serial chain) ----
    obs_all = jnp.dot(H_t, states_sc[...],
                      preferred_element_type=jnp.float32)     # (Dy, T*P)
    diff = obs_all - data_ref[0]                              # (Dy, T*P)
    ll_all = -0.5 * jnp.sum(diff * diff, axis=0, keepdims=True)   # (1, T*P)

    # --- phase 3: serial log-weight scan (one vreg per step) ----------------
    for t in range(T):
        new_lw = logw + ll_all[:, t * P:(t + 1) * P]          # (1, P)
        m = jnp.max(new_lw, axis=1, keepdims=True)
        p = jnp.exp(new_lw - m)
        s = jnp.sum(p, axis=1, keepdims=True)
        w_sc[:, t * P:(t + 1) * P] = p / s                    # normalised weights (exact)
        logw = new_lw - (m + jnp.log(s))                      # normalised log-weights
        # NOTE: like the reference, fully degenerate (-inf) weights give NaN.

    # --- phase 4: all T weighted posterior means in ONE MXU matmul ----------
    weighted = states_sc[...] * w_sc[...]                     # (D, T*P)
    # block selector sums particles of each step; its last column is zero so
    # output row `time_extent` is written as zeros (single full-block store).
    out_ref[0] = jnp.dot(weighted, sel_ref[...],
                         preferred_element_type=jnp.float32)  # (D, T+1)


@functools.partial(jax.jit, static_argnames=("time_extent",))
def sis_forward(data, noise, init_state, init_logw, A, H, *, time_extent):
    T = time_extent
    B, P, D = init_state.shape
    Dy = data.shape[-1]

    A_t = jnp.transpose(A)                                    # (D, D)
    H_t = jnp.transpose(H)                                    # (Dy, D)

    # Observations lane-repeated per particle, contiguous per batch: (B, Dy, T*P)
    data_rep = jnp.broadcast_to(
        jnp.transpose(data[:T], (1, 2, 0))[:, :, :, None],
        (B, Dy, T, P)).reshape(B, Dy, T * P)

    # Process noise, transposed + contiguous per batch: (B, D, T*P)
    noise_t = jnp.transpose(noise, (1, 3, 0, 2)).reshape(B, D, T * P)

    init_state_t = jnp.transpose(init_state, (0, 2, 1))       # (B, D, P)
    logw_in = init_logw[:, None, :]                           # (B, 1, P) lane-major

    # 0/1 block selector: column t sums particles of step t; column T is zero.
    sel = (jnp.arange(T * P, dtype=jnp.int32)[:, None] // P
           == jnp.arange(T + 1, dtype=jnp.int32)[None, :]).astype(jnp.float32)

    kernel = functools.partial(sis_kernel, time_extent=T, n_particles=P,
                               state_dim=D, obs_dim=Dy)

    out = pl.pallas_call(
        kernel,
        out_shape=jax.ShapeDtypeStruct((B, D, T + 1), jnp.float32),
        grid_spec=pltpu.PrefetchScalarGridSpec(
            num_scalar_prefetch=0,
            grid=(B,),                                        # independent batches only
            in_specs=[
                pl.BlockSpec((1, Dy, T * P), lambda b: (b, 0, 0)),  # observations (resident)
                pl.BlockSpec((1, D, T * P), lambda b: (b, 0, 0)),   # noise (contiguous per batch)
                pl.BlockSpec((1, D, P), lambda b: (b, 0, 0)),       # prior particles (transposed)
                pl.BlockSpec((1, 1, P), lambda b: (b, 0, 0)),       # prior log-weights (lane-major)
                pl.BlockSpec((D, D), lambda b: (0, 0)),             # A^T
                pl.BlockSpec((Dy, D), lambda b: (0, 0)),            # H^T
                pl.BlockSpec((T * P, T + 1), lambda b: (0, 0)),     # particle-sum selector
            ],
            out_specs=pl.BlockSpec((1, D, T + 1), lambda b: (b, 0, 0)),
            scratch_shapes=[
                pltpu.VMEM((D, T * P), jnp.float32),                # all post-transition states
                pltpu.VMEM((1, T * P), jnp.float32),                # all normalised weights
            ],
        ),
        compiler_params=pltpu.CompilerParams(
            dimension_semantics=("parallel",)),               # batches independent (v7x: 2 TCs)
    )(data_rep, noise_t, init_state_t, logw_in, A_t, H_t, sel)

    return jnp.transpose(out, (2, 0, 1))                      # (T+1, B, D), reference layout


def sis_reference(data, noise, init_state, init_logw, A, H, time_extent):
    """Pure-JAX reference of the instantiated SIS forward (rows 0..T-1)."""
    hp = jax.lax.Precision.HIGHEST

    def normalise(lw):
        m = jnp.max(lw, axis=-1, keepdims=True)
        s = jnp.sum(jnp.exp(lw - m), axis=-1, keepdims=True)
        return lw - (m + jnp.log(s))

    state = init_state                                        # (B, P, D)
    logw = normalise(init_logw)                               # (B, P)
    outs = []
    for t in range(time_extent):
        state = jnp.einsum('bpd,de->bpe', state, A, precision=hp) + noise[t]
        obs = jnp.einsum('bpd,dy->bpy', state, H, precision=hp)
        ll = -0.5 * jnp.sum((obs - data[t][:, None, :]) ** 2, axis=-1)
        logw = normalise(logw + ll)
        w = jnp.exp(logw)
        outs.append(jnp.sum(w[..., None] * state, axis=1))    # (B, D)
    return jnp.stack(outs, axis=0)                            # (T, B, D)


if __name__ == "__main__":
    # Small, deterministic problem sizes.
    B = 2            # batch
    P = 128          # particles (= lane width)
    D = 32           # state dimension
    Dy = 16          # observation dimension
    time_extent = 8  # number of SIS steps

    key = jax.random.PRNGKey(0)
    k_data, k_state, k_noise, k_A, k_H = jax.random.split(key, 5)

    # Observations (time-major); data[0] is consumed by the prior.
    data = jax.random.normal(k_data, (time_extent + 1, B, Dy), jnp.float32)
    # Pre-sampled process noise so the Markov kernel is deterministic in-kernel.
    noise = 0.1 * jax.random.normal(k_noise, (time_extent, B, P, D), jnp.float32)

    # Deterministic model parameters.
    A = (0.9 * jnp.eye(D, dtype=jnp.float32)
         + 0.01 * jax.random.normal(k_A, (D, D), jnp.float32))       # transition
    H = jax.random.normal(k_H, (D, Dy), jnp.float32) / jnp.sqrt(D)   # observation

    # prior(n_particles, data[0]) -> (state, log_weight)   (plain-JAX glue)
    init_state = jax.random.normal(k_state, (B, P, D), jnp.float32)
    init_obs = jnp.einsum('bpd,dy->bpy', init_state, H,
                          precision=jax.lax.Precision.HIGHEST)
    init_logw = -0.5 * jnp.sum((init_obs - data[0][:, None, :]) ** 2, axis=-1)  # (B, P)

    out = sis_forward(data, noise, init_state, init_logw, A, H,
                      time_extent=time_extent)
    out = jax.block_until_ready(out)

    assert out.shape == (time_extent + 1, B, D)
    assert out.dtype == jnp.float32
    assert bool(jnp.all(jnp.isfinite(out[:time_extent])))

    ref = sis_reference(data, noise, init_state, init_logw, A, H, time_extent)
    ref = jax.block_until_ready(ref)
    assert bool(jnp.allclose(out[:time_extent], ref, atol=2e-3, rtol=2e-3))

    print("KERNEL_OK")
</pallas_src>

<mosaic_0001>
module attributes {stable_mosaic.version = 11 : i64} {
  func.func @sis_kernel(%arg0: i32, %arg1: memref<1x16x1024xf32, #tpu.memory_space<vmem>>, %arg2: memref<1x32x1024xf32, #tpu.memory_space<vmem>>, %arg3: memref<1x32x128xf32, #tpu.memory_space<vmem>>, %arg4: memref<1x1x128xf32, #tpu.memory_space<vmem>>, %arg5: memref<32x32xf32, #tpu.memory_space<vmem>>, %arg6: memref<16x32xf32, #tpu.memory_space<vmem>>, %arg7: memref<1024x9xf32, #tpu.memory_space<vmem>>, %arg8: memref<1x32x9xf32, #tpu.memory_space<vmem>>, %arg9: memref<32x1024xf32, #tpu.memory_space<vmem>>, %arg10: memref<1x1024xf32, #tpu.memory_space<vmem>>) attributes {dimension_semantics = [#tpu.dimension_semantics<parallel>], iteration_bounds = array<i64: 2>, scalar_prefetch = 0 : i64, scratch_operands = 2 : i64, tpu.core_type = #tpu.core_type<tc>, window_params = [{transform_indices = @transform_0, window_bounds = array<i64: 1, 16, 1024>}, {transform_indices = @transform_1, window_bounds = array<i64: 1, 32, 1024>}, {transform_indices = @transform_2, window_bounds = array<i64: 1, 32, 128>}, {transform_indices = @transform_3, window_bounds = array<i64: 1, 1, 128>}, {pipeline_mode = #tpu.pipeline_mode<synchronous>, transform_indices = @transform_4, window_bounds = array<i64: 32, 32>}, {pipeline_mode = #tpu.pipeline_mode<synchronous>, transform_indices = @transform_5, window_bounds = array<i64: 16, 32>}, {pipeline_mode = #tpu.pipeline_mode<synchronous>, transform_indices = @transform_6, window_bounds = array<i64: 1024, 9>}, {transform_indices = @transform_7, window_bounds = array<i64: 1, 32, 9>}]} {
    %c0 = arith.constant 0 : index
    %c0_0 = arith.constant 0 : index
    %c0_1 = arith.constant 0 : index
    %0 = vector.load %arg4[%c0, %c0_0, %c0_1] : memref<1x1x128xf32, #tpu.memory_space<vmem>>, vector<1x1x128xf32>
    %1 = vector.shape_cast %0 : vector<1x1x128xf32> to vector<1x128xf32>
    %cst = arith.constant dense<0xFF800000> : vector<1xf32>
    %2 = vector.multi_reduction <maximumf>, %1, %cst [1] : vector<1x128xf32> to vector<1xf32>
    %3 = vector.shape_cast %2 : vector<1xf32> to vector<1x1xf32>
    %4 = vector.broadcast %3 : vector<1x1xf32> to vector<1x128xf32>
    %5 = arith.subf %1, %4 : vector<1x128xf32>
    %6 = math.exp %5 : vector<1x128xf32>
    %cst_2 = arith.constant dense<0.000000e+00> : vector<1xf32>
    %7 = vector.multi_reduction <add>, %6, %cst_2 [1] : vector<1x128xf32> to vector<1xf32>
    %8 = vector.shape_cast %7 : vector<1xf32> to vector<1x1xf32>
    %9 = math.log %8 : vector<1x1xf32>
    %10 = arith.addf %3, %9 : vector<1x1xf32>
    %11 = vector.broadcast %10 : vector<1x1xf32> to vector<1x128xf32>
    %12 = arith.subf %1, %11 : vector<1x128xf32>
    %c0_3 = arith.constant 0 : index
    %c0_4 = arith.constant 0 : index
    %13 = vector.load %arg5[%c0_3, %c0_4] : memref<32x32xf32, #tpu.memory_space<vmem>>, vector<32x32xf32>
    %c0_5 = arith.constant 0 : index
    %c0_6 = arith.constant 0 : index
    %14 = vector.load %arg6[%c0_5, %c0_6] : memref<16x32xf32, #tpu.memory_space<vmem>>, vector<16x32xf32>
    %c0_7 = arith.constant 0 : index
    %c0_8 = arith.constant 0 : index
    %c0_9 = arith.constant 0 : index
    %15 = vector.load %arg3[%c0_7, %c0_8, %c0_9] : memref<1x32x128xf32, #tpu.memory_space<vmem>>, vector<1x32x128xf32>
    %16 = vector.shape_cast %15 : vector<1x32x128xf32> to vector<32x128xf32>
    %cst_10 = arith.constant dense<0.000000e+00> : vector<32x128xf32>
    %17 = tpu.matmul %13, %16, %cst_10 {dimension_numbers = #tpu.dot_dimension_numbers<[1], [0], [0], [1], [0, 0, 1, 1], [], []>} : vector<32x32xf32>, vector<32x128xf32>, vector<32x128xf32> -> vector<32x128xf32>
    %c0_11 = arith.constant 0 : index
    %c0_12 = arith.constant 0 : index
    %c0_13 = arith.constant 0 : index
    %18 = vector.load %arg2[%c0_11, %c0_12, %c0_13] : memref<1x32x1024xf32, #tpu.memory_space<vmem>>, vector<1x32x128xf32>
    %19 = vector.shape_cast %18 : vector<1x32x128xf32> to vector<32x128xf32>
    %20 = arith.addf %17, %19 : vector<32x128xf32>
    %c0_14 = arith.constant 0 : index
    %c0_15 = arith.constant 0 : index
    %21 = vector.load %arg9[%c0_14, %c0_15] : memref<32x1024xf32, #tpu.memory_space<vmem>>, vector<32x128xf32>
    tpu.vector_store %arg9[%c0_14, %c0_15], %20 {strides = array<i32>} : memref<32x1024xf32, #tpu.memory_space<vmem>>, vector<32x128xf32>,
    %cst_16 = arith.constant dense<0.000000e+00> : vector<32x128xf32>
    %22 = tpu.matmul %13, %20, %cst_16 {dimension_numbers = #tpu.dot_dimension_numbers<[1], [0], [0], [1], [0, 0, 1, 1], [], []>} : vector<32x32xf32>, vector<32x128xf32>, vector<32x128xf32> -> vector<32x128xf32>
    %c0_17 = arith.constant 0 : index
    %c0_18 = arith.constant 0 : index
    %c128 = arith.constant 128 : index
    %23 = vector.load %arg2[%c0_17, %c0_18, %c128] : memref<1x32x1024xf32, #tpu.memory_space<vmem>>, vector<1x32x128xf32>
    %24 = vector.shape_cast %23 : vector<1x32x128xf32> to vector<32x128xf32>
    %25 = arith.addf %22, %24 : vector<32x128xf32>
    %c0_19 = arith.constant 0 : index
    %c128_20 = arith.constant 128 : index
    %26 = vector.load %arg9[%c0_19, %c128_20] : memref<32x1024xf32, #tpu.memory_space<vmem>>, vector<32x128xf32>
    tpu.vector_store %arg9[%c0_19, %c128_20], %25 {strides = array<i32>} : memref<32x1024xf32, #tpu.memory_space<vmem>>, vector<32x128xf32>,
    %cst_21 = arith.constant dense<0.000000e+00> : vector<32x128xf32>
    %27 = tpu.matmul %13, %25, %cst_21 {dimension_numbers = #tpu.dot_dimension_numbers<[1], [0], [0], [1], [0, 0, 1, 1], [], []>} : vector<32x32xf32>, vector<32x128xf32>, vector<32x128xf32> -> vector<32x128xf32>
    %c0_22 = arith.constant 0 : index
    %c0_23 = arith.constant 0 : index
    %c256 = arith.constant 256 : index
    %28 = vector.load %arg2[%c0_22, %c0_23, %c256] : memref<1x32x1024xf32, #tpu.memory_space<vmem>>, vector<1x32x128xf32>
    %29 = vector.shape_cast %28 : vector<1x32x128xf32> to vector<32x128xf32>
    %30 = arith.addf %27, %29 : vector<32x128xf32>
    %c0_24 = arith.constant 0 : index
    %c256_25 = arith.constant 256 : index
    %31 = vector.load %arg9[%c0_24, %c256_25] : memref<32x1024xf32, #tpu.memory_space<vmem>>, vector<32x128xf32>
    tpu.vector_store %arg9[%c0_24, %c256_25], %30 {strides = array<i32>} : memref<32x1024xf32, #tpu.memory_space<vmem>>, vector<32x128xf32>,
    %cst_26 = arith.constant dense<0.000000e+00> : vector<32x128xf32>
    %32 = tpu.matmul %13, %30, %cst_26 {dimension_numbers = #tpu.dot_dimension_numbers<[1], [0], [0], [1], [0, 0, 1, 1], [], []>} : vector<32x32xf32>, vector<32x128xf32>, vector<32x128xf32> -> vector<32x128xf32>
    %c0_27 = arith.constant 0 : index
    %c0_28 = arith.constant 0 : index
    %c384 = arith.constant 384 : index
    %33 = vector.load %arg2[%c0_27, %c0_28, %c384] : memref<1x32x1024xf32, #tpu.memory_space<vmem>>, vector<1x32x128xf32>
    %34 = vector.shape_cast %33 : vector<1x32x128xf32> to vector<32x128xf32>
    %35 = arith.addf %32, %34 : vector<32x128xf32>
    %c0_29 = arith.constant 0 : index
    %c384_30 = arith.constant 384 : index
    %36 = vector.load %arg9[%c0_29, %c384_30] : memref<32x1024xf32, #tpu.memory_space<vmem>>, vector<32x128xf32>
    tpu.vector_store %arg9[%c0_29, %c384_30], %35 {strides = array<i32>} : memref<32x1024xf32, #tpu.memory_space<vmem>>, vector<32x128xf32>,
    %cst_31 = arith.constant dense<0.000000e+00> : vector<32x128xf32>
    %37 = tpu.matmul %13, %35, %cst_31 {dimension_numbers = #tpu.dot_dimension_numbers<[1], [0], [0], [1], [0, 0, 1, 1], [], []>} : vector<32x32xf32>, vector<32x128xf32>, vector<32x128xf32> -> vector<32x128xf32>
    %c0_32 = arith.constant 0 : index
    %c0_33 = arith.constant 0 : index
    %c512 = arith.constant 512 : index
    %38 = vector.load %arg2[%c0_32, %c0_33, %c512] : memref<1x32x1024xf32, #tpu.memory_space<vmem>>, vector<1x32x128xf32>
    %39 = vector.shape_cast %38 : vector<1x32x128xf32> to vector<32x128xf32>
    %40 = arith.addf %37, %39 : vector<32x128xf32>
    %c0_34 = arith.constant 0 : index
    %c512_35 = arith.constant 512 : index
    %41 = vector.load %arg9[%c0_34, %c512_35] : memref<32x1024xf32, #tpu.memory_space<vmem>>, vector<32x128xf32>
    tpu.vector_store %arg9[%c0_34, %c512_35], %40 {strides = array<i32>} : memref<32x1024xf32, #tpu.memory_space<vmem>>, vector<32x128xf32>,
    %cst_36 = arith.constant dense<0.000000e+00> : vector<32x128xf32>
    %42 = tpu.matmul %13, %40, %cst_36 {dimension_numbers = #tpu.dot_dimension_numbers<[1], [0], [0], [1], [0, 0, 1, 1], [], []>} : vector<32x32xf32>, vector<32x128xf32>, vector<32x128xf32> -> vector<32x128xf32>
    %c0_37 = arith.constant 0 : index
    %c0_38 = arith.constant 0 : index
    %c640 = arith.constant 640 : index
    %43 = vector.load %arg2[%c0_37, %c0_38, %c640] : memref<1x32x1024xf32, #tpu.memory_space<vmem>>, vector<1x32x128xf32>
    %44 = vector.shape_cast %43 : vector<1x32x128xf32> to vector<32x128xf32>
    %45 = arith.addf %42, %44 : vector<32x128xf32>
    %c0_39 = arith.constant 0 : index
    %c640_40 = arith.constant 640 : index
    %46 = vector.load %arg9[%c0_39, %c640_40] : memref<32x1024xf32, #tpu.memory_space<vmem>>, vector<32x128xf32>
    tpu.vector_store %arg9[%c0_39, %c640_40], %45 {strides = array<i32>} : memref<32x1024xf32, #tpu.memory_space<vmem>>, vector<32x128xf32>,
    %cst_41 = arith.constant dense<0.000000e+00> : vector<32x128xf32>
    %47 = tpu.matmul %13, %45, %cst_41 {dimension_numbers = #tpu.dot_dimension_numbers<[1], [0], [0], [1], [0, 0, 1, 1], [], []>} : vector<32x32xf32>, vector<32x128xf32>, vector<32x128xf32> -> vector<32x128xf32>
    %c0_42 = arith.constant 0 : index
    %c0_43 = arith.constant 0 : index
    %c768 = arith.constant 768 : index
    %48 = vector.load %arg2[%c0_42, %c0_43, %c768] : memref<1x32x1024xf32, #tpu.memory_space<vmem>>, vector<1x32x128xf32>
    %49 = vector.shape_cast %48 : vector<1x32x128xf32> to vector<32x128xf32>
    %50 = arith.addf %47, %49 : vector<32x128xf32>
    %c0_44 = arith.constant 0 : index
    %c768_45 = arith.constant 768 : index
    %51 = vector.load %arg9[%c0_44, %c768_45] : memref<32x1024xf32, #tpu.memory_space<vmem>>, vector<32x128xf32>
    tpu.vector_store %arg9[%c0_44, %c768_45], %50 {strides = array<i32>} : memref<32x1024xf32, #tpu.memory_space<vmem>>, vector<32x128xf32>,
    %cst_46 = arith.constant dense<0.000000e+00> : vector<32x128xf32>
    %52 = tpu.matmul %13, %50, %cst_46 {dimension_numbers = #tpu.dot_dimension_numbers<[1], [0], [0], [1], [0, 0, 1, 1], [], []>} : vector<32x32xf32>, vector<32x128xf32>, vector<32x128xf32> -> vector<32x128xf32>
    %c0_47 = arith.constant 0 : index
    %c0_48 = arith.constant 0 : index
    %c896 = arith.constant 896 : index
    %53 = vector.load %arg2[%c0_47, %c0_48, %c896] : memref<1x32x1024xf32, #tpu.memory_space<vmem>>, vector<1x32x128xf32>
    %54 = vector.shape_cast %53 : vector<1x32x128xf32> to vector<32x128xf32>
    %55 = arith.addf %52, %54 : vector<32x128xf32>
    %c0_49 = arith.constant 0 : index
    %c896_50 = arith.constant 896 : index
    %56 = vector.load %arg9[%c0_49, %c896_50] : memref<32x1024xf32, #tpu.memory_space<vmem>>, vector<32x128xf32>
    tpu.vector_store %arg9[%c0_49, %c896_50], %55 {strides = array<i32>} : memref<32x1024xf32, #tpu.memory_space<vmem>>, vector<32x128xf32>,
    %c0_51 = arith.constant 0 : index
    %c0_52 = arith.constant 0 : index
    %57 = vector.load %arg9[%c0_51, %c0_52] : memref<32x1024xf32, #tpu.memory_space<vmem>>, vector<32x1024xf32>
    %cst_53 = arith.constant dense<0.000000e+00> : vector<16x1024xf32>
    %58 = tpu.matmul %14, %57, %cst_53 {dimension_numbers = #tpu.dot_dimension_numbers<[1], [0], [0], [1], [0, 0, 1, 1], [], []>} : vector<16x32xf32>, vector<32x1024xf32>, vector<16x1024xf32> -> vector<16x1024xf32>
    %c0_54 = arith.constant 0 : index
    %c0_55 = arith.constant 0 : index
    %c0_56 = arith.constant 0 : index
    %59 = vector.load %arg1[%c0_54, %c0_55, %c0_56] : memref<1x16x1024xf32, #tpu.memory_space<vmem>>, vector<1x16x1024xf32>
    %60 = vector.shape_cast %59 : vector<1x16x1024xf32> to vector<16x1024xf32>
    %61 = arith.subf %58, %60 : vector<16x1024xf32>
    %62 = arith.mulf %61, %61 : vector<16x1024xf32>
    %cst_57 = arith.constant dense<0.000000e+00> : vector<1024xf32>
    %63 = vector.multi_reduction <add>, %62, %cst_57 [0] : vector<16x1024xf32> to vector<1024xf32>
    %64 = vector.shape_cast %63 : vector<1024xf32> to vector<1x1024xf32>
    %cst_58 = arith.constant -5.000000e-01 : f32
    %65 = vector.broadcast %cst_58 : f32 to vector<1x1024xf32>
    %66 = arith.mulf %65, %64 : vector<1x1024xf32>
    %67 = vector.extract_strided_slice %66 {offsets = [0, 0], sizes = [1, 128], strides = [1, 1]} : vector<1x1024xf32> to vector<1x128xf32>
    %68 = arith.addf %12, %67 : vector<1x128xf32>
    %cst_59 = arith.constant dense<0xFF800000> : vector<1xf32>
    %69 = vector.multi_reduction <maximumf>, %68, %cst_59 [1] : vector<1x128xf32> to vector<1xf32>
    %70 = vector.shape_cast %69 : vector<1xf32> to vector<1x1xf32>
    %71 = vector.broadcast %70 : vector<1x1xf32> to vector<1x128xf32>
    %72 = arith.subf %68, %71 : vector<1x128xf32>
    %73 = math.exp %72 : vector<1x128xf32>
    %cst_60 = arith.constant dense<0.000000e+00> : vector<1xf32>
    %74 = vector.multi_reduction <add>, %73, %cst_60 [1] : vector<1x128xf32> to vector<1xf32>
    %75 = vector.shape_cast %74 : vector<1xf32> to vector<1x1xf32>
    %76 = vector.broadcast %75 : vector<1x1xf32> to vector<1x128xf32>
    %77 = arith.divf %73, %76 : vector<1x128xf32>
    %c0_61 = arith.constant 0 : index
    %c0_62 = arith.constant 0 : index
    %78 = vector.load %arg10[%c0_61, %c0_62] : memref<1x1024xf32, #tpu.memory_space<vmem>>, vector<1x128xf32>
    tpu.vector_store %arg10[%c0_61, %c0_62], %77 {strides = array<i32>} : memref<1x1024xf32, #tpu.memory_space<vmem>>, vector<1x128xf32>,
    %79 = math.log %75 : vector<1x1xf32>
    %80 = arith.addf %70, %79 : vector<1x1xf32>
    %81 = vector.broadcast %80 : vector<1x1xf32> to vector<1x128xf32>
    %82 = arith.subf %68, %81 : vector<1x128xf32>
    %83 = vector.extract_strided_slice %66 {offsets = [0, 128], sizes = [1, 128], strides = [1, 1]} : vector<1x1024xf32> to vector<1x128xf32>
    %84 = arith.addf %82, %83 : vector<1x128xf32>
    %cst_63 = arith.constant dense<0xFF800000> : vector<1xf32>
    %85 = vector.multi_reduction <maximumf>, %84, %cst_63 [1] : vector<1x128xf32> to vector<1xf32>
    %86 = vector.shape_cast %85 : vector<1xf32> to vector<1x1xf32>
    %87 = vector.broadcast %86 : vector<1x1xf32> to vector<1x128xf32>
    %88 = arith.subf %84, %87 : vector<1x128xf32>
    %89 = math.exp %88 : vector<1x128xf32>
    %cst_64 = arith.constant dense<0.000000e+00> : vector<1xf32>
    %90 = vector.multi_reduction <add>, %89, %cst_64 [1] : vector<1x128xf32> to vector<1xf32>
    %91 = vector.shape_cast %90 : vector<1xf32> to vector<1x1xf32>
    %92 = vector.broadcast %91 : vector<1x1xf32> to vector<1x128xf32>
    %93 = arith.divf %89, %92 : vector<1x128xf32>
    %c0_65 = arith.constant 0 : index
    %c128_66 = arith.constant 128 : index
    %94 = vector.load %arg10[%c0_65, %c128_66] : memref<1x1024xf32, #tpu.memory_space<vmem>>, vector<1x128xf32>
    tpu.vector_store %arg10[%c0_65, %c128_66], %93 {strides = array<i32>} : memref<1x1024xf32, #tpu.memory_space<vmem>>, vector<1x128xf32>,
    %95 = math.log %91 : vector<1x1xf32>
    %96 = arith.addf %86, %95 : vector<1x1xf32>
    %97 = vector.broadcast %96 : vector<1x1xf32> to vector<1x128xf32>
    %98 = arith.subf %84, %97 : vector<1x128xf32>
    %99 = vector.extract_strided_slice %66 {offsets = [0, 256], sizes = [1, 128], strides = [1, 1]} : vector<1x1024xf32> to vector<1x128xf32>
    %100 = arith.addf %98, %99 : vector<1x128xf32>
    %cst_67 = arith.constant dense<0xFF800000> : vector<1xf32>
    %101 = vector.multi_reduction <maximumf>, %100, %cst_67 [1] : vector<1x128xf32> to vector<1xf32>
    %102 = vector.shape_cast %101 : vector<1xf32> to vector<1x1xf32>
    %103 = vector.broadcast %102 : vector<1x1xf32> to vector<1x128xf32>
    %104 = arith.subf %100, %103 : vector<1x128xf32>
    %105 = math.exp %104 : vector<1x128xf32>
    %cst_68 = arith.constant dense<0.000000e+00> : vector<1xf32>
    %106 = vector.multi_reduction <add>, %105, %cst_68 [1] : vector<1x128xf32> to vector<1xf32>
    %107 = vector.shape_cast %106 : vector<1xf32> to vector<1x1xf32>
    %108 = vector.broadcast %107 : vector<1x1xf32> to vector<1x128xf32>
    %109 = arith.divf %105, %108 : vector<1x128xf32>
    %c0_69 = arith.constant 0 : index
    %c256_70 = arith.constant 256 : index
    %110 = vector.load %arg10[%c0_69, %c256_70] : memref<1x1024xf32, #tpu.memory_space<vmem>>, vector<1x128xf32>
    tpu.vector_store %arg10[%c0_69, %c256_70], %109 {strides = array<i32>} : memref<1x1024xf32, #tpu.memory_space<vmem>>, vector<1x128xf32>,
    %111 = math.log %107 : vector<1x1xf32>
    %112 = arith.addf %102, %111 : vector<1x1xf32>
    %113 = vector.broadcast %112 : vector<1x1xf32> to vector<1x128xf32>
    %114 = arith.subf %100, %113 : vector<1x128xf32>
    %115 = vector.extract_strided_slice %66 {offsets = [0, 384], sizes = [1, 128], strides = [1, 1]} : vector<1x1024xf32> to vector<1x128xf32>
    %116 = arith.addf %114, %115 : vector<1x128xf32>
    %cst_71 = arith.constant dense<0xFF800000> : vector<1xf32>
    %117 = vector.multi_reduction <maximumf>, %116, %cst_71 [1] : vector<1x128xf32> to vector<1xf32>
    %118 = vector.shape_cast %117 : vector<1xf32> to vector<1x1xf32>
    %119 = vector.broadcast %118 : vector<1x1xf32> to vector<1x128xf32>
    %120 = arith.subf %116, %119 : vector<1x128xf32>
    %121 = math.exp %120 : vector<1x128xf32>
    %cst_72 = arith.constant dense<0.000000e+00> : vector<1xf32>
    %122 = vector.multi_reduction <add>, %121, %cst_72 [1] : vector<1x128xf32> to vector<1xf32>
    %123 = vector.shape_cast %122 : vector<1xf32> to vector<1x1xf32>
    %124 = vector.broadcast %123 : vector<1x1xf32> to vector<1x128xf32>
    %125 = arith.divf %121, %124 : vector<1x128xf32>
    %c0_73 = arith.constant 0 : index
    %c384_74 = arith.constant 384 : index
    %126 = vector.load %arg10[%c0_73, %c384_74] : memref<1x1024xf32, #tpu.memory_space<vmem>>, vector<1x128xf32>
    tpu.vector_store %arg10[%c0_73, %c384_74], %125 {strides = array<i32>} : memref<1x1024xf32, #tpu.memory_space<vmem>>, vector<1x128xf32>,
    %127 = math.log %123 : vector<1x1xf32>
    %128 = arith.addf %118, %127 : vector<1x1xf32>
    %129 = vector.broadcast %128 : vector<1x1xf32> to vector<1x128xf32>
    %130 = arith.subf %116, %129 : vector<1x128xf32>
    %131 = vector.extract_strided_slice %66 {offsets = [0, 512], sizes = [1, 128], strides = [1, 1]} : vector<1x1024xf32> to vector<1x128xf32>
    %132 = arith.addf %130, %131 : vector<1x128xf32>
    %cst_75 = arith.constant dense<0xFF800000> : vector<1xf32>
    %133 = vector.multi_reduction <maximumf>, %132, %cst_75 [1] : vector<1x128xf32> to vector<1xf32>
    %134 = vector.shape_cast %133 : vector<1xf32> to vector<1x1xf32>
    %135 = vector.broadcast %134 : vector<1x1xf32> to vector<1x128xf32>
    %136 = arith.subf %132, %135 : vector<1x128xf32>
    %137 = math.exp %136 : vector<1x128xf32>
    %cst_76 = arith.constant dense<0.000000e+00> : vector<1xf32>
    %138 = vector.multi_reduction <add>, %137, %cst_76 [1] : vector<1x128xf32> to vector<1xf32>
    %139 = vector.shape_cast %138 : vector<1xf32> to vector<1x1xf32>
    %140 = vector.broadcast %139 : vector<1x1xf32> to vector<1x128xf32>
    %141 = arith.divf %137, %140 : vector<1x128xf32>
    %c0_77 = arith.constant 0 : index
    %c512_78 = arith.constant 512 : index
    %142 = vector.load %arg10[%c0_77, %c512_78] : memref<1x1024xf32, #tpu.memory_space<vmem>>, vector<1x128xf32>
    tpu.vector_store %arg10[%c0_77, %c512_78], %141 {strides = array<i32>} : memref<1x1024xf32, #tpu.memory_space<vmem>>, vector<1x128xf32>,
    %143 = math.log %139 : vector<1x1xf32>
    %144 = arith.addf %134, %143 : vector<1x1xf32>
    %145 = vector.broadcast %144 : vector<1x1xf32> to vector<1x128xf32>
    %146 = arith.subf %132, %145 : vector<1x128xf32>
    %147 = vector.extract_strided_slice %66 {offsets = [0, 640], sizes = [1, 128], strides = [1, 1]} : vector<1x1024xf32> to vector<1x128xf32>
    %148 = arith.addf %146, %147 : vector<1x128xf32>
    %cst_79 = arith.constant dense<0xFF800000> : vector<1xf32>
    %149 = vector.multi_reduction <maximumf>, %148, %cst_79 [1] : vector<1x128xf32> to vector<1xf32>
    %150 = vector.shape_cast %149 : vector<1xf32> to vector<1x1xf32>
    %151 = vector.broadcast %150 : vector<1x1xf32> to vector<1x128xf32>
    %152 = arith.subf %148, %151 : vector<1x128xf32>
    %153 = math.exp %152 : vector<1x128xf32>
    %cst_80 = arith.constant dense<0.000000e+00> : vector<1xf32>
    %154 = vector.multi_reduction <add>, %153, %cst_80 [1] : vector<1x128xf32> to vector<1xf32>
    %155 = vector.shape_cast %154 : vector<1xf32> to vector<1x1xf32>
    %156 = vector.broadcast %155 : vector<1x1xf32> to vector<1x128xf32>
    %157 = arith.divf %153, %156 : vector<1x128xf32>
    %c0_81 = arith.constant 0 : index
    %c640_82 = arith.constant 640 : index
    %158 = vector.load %arg10[%c0_81, %c640_82] : memref<1x1024xf32, #tpu.memory_space<vmem>>, vector<1x128xf32>
    tpu.vector_store %arg10[%c0_81, %c640_82], %157 {strides = array<i32>} : memref<1x1024xf32, #tpu.memory_space<vmem>>, vector<1x128xf32>,
    %159 = math.log %155 : vector<1x1xf32>
    %160 = arith.addf %150, %159 : vector<1x1xf32>
    %161 = vector.broadcast %160 : vector<1x1xf32> to vector<1x128xf32>
    %162 = arith.subf %148, %161 : vector<1x128xf32>
    %163 = vector.extract_strided_slice %66 {offsets = [0, 768], sizes = [1, 128], strides = [1, 1]} : vector<1x1024xf32> to vector<1x128xf32>
    %164 = arith.addf %162, %163 : vector<1x128xf32>
    %cst_83 = arith.constant dense<0xFF800000> : vector<1xf32>
    %165 = vector.multi_reduction <maximumf>, %164, %cst_83 [1] : vector<1x128xf32> to vector<1xf32>
    %166 = vector.shape_cast %165 : vector<1xf32> to vector<1x1xf32>
    %167 = vector.broadcast %166 : vector<1x1xf32> to vector<1x128xf32>
    %168 = arith.subf %164, %167 : vector<1x128xf32>
    %169 = math.exp %168 : vector<1x128xf32>
    %cst_84 = arith.constant dense<0.000000e+00> : vector<1xf32>
    %170 = vector.multi_reduction <add>, %169, %cst_84 [1] : vector<1x128xf32> to vector<1xf32>
    %171 = vector.shape_cast %170 : vector<1xf32> to vector<1x1xf32>
    %172 = vector.broadcast %171 : vector<1x1xf32> to vector<1x128xf32>
    %173 = arith.divf %169, %172 : vector<1x128xf32>
    %c0_85 = arith.constant 0 : index
    %c768_86 = arith.constant 768 : index
    %174 = vector.load %arg10[%c0_85, %c768_86] : memref<1x1024xf32, #tpu.memory_space<vmem>>, vector<1x128xf32>
    tpu.vector_store %arg10[%c0_85, %c768_86], %173 {strides = array<i32>} : memref<1x1024xf32, #tpu.memory_space<vmem>>, vector<1x128xf32>,
    %175 = math.log %171 : vector<1x1xf32>
    %176 = arith.addf %166, %175 : vector<1x1xf32>
    %177 = vector.broadcast %176 : vector<1x1xf32> to vector<1x128xf32>
    %178 = arith.subf %164, %177 : vector<1x128xf32>
    %179 = vector.extract_strided_slice %66 {offsets = [0, 896], sizes = [1, 128], strides = [1, 1]} : vector<1x1024xf32> to vector<1x128xf32>
    %180 = arith.addf %178, %179 : vector<1x128xf32>
    %cst_87 = arith.constant dense<0xFF800000> : vector<1xf32>
    %181 = vector.multi_reduction <maximumf>, %180, %cst_87 [1] : vector<1x128xf32> to vector<1xf32>
    %182 = vector.shape_cast %181 : vector<1xf32> to vector<1x1xf32>
    %183 = vector.broadcast %182 : vector<1x1xf32> to vector<1x128xf32>
    %184 = arith.subf %180, %183 : vector<1x128xf32>
    %185 = math.exp %184 : vector<1x128xf32>
    %cst_88 = arith.constant dense<0.000000e+00> : vector<1xf32>
    %186 = vector.multi_reduction <add>, %185, %cst_88 [1] : vector<1x128xf32> to vector<1xf32>
    %187 = vector.shape_cast %186 : vector<1xf32> to vector<1x1xf32>
    %188 = vector.broadcast %187 : vector<1x1xf32> to vector<1x128xf32>
    %189 = arith.divf %185, %188 : vector<1x128xf32>
    %c0_89 = arith.constant 0 : index
    %c896_90 = arith.constant 896 : index
    %190 = vector.load %arg10[%c0_89, %c896_90] : memref<1x1024xf32, #tpu.memory_space<vmem>>, vector<1x128xf32>
    tpu.vector_store %arg10[%c0_89, %c896_90], %189 {strides = array<i32>} : memref<1x1024xf32, #tpu.memory_space<vmem>>, vector<1x128xf32>,
    %c0_91 = arith.constant 0 : index
    %c0_92 = arith.constant 0 : index
    %191 = vector.load %arg9[%c0_91, %c0_92] : memref<32x1024xf32, #tpu.memory_space<vmem>>, vector<32x1024xf32>
    %c0_93 = arith.constant 0 : index
    %c0_94 = arith.constant 0 : index
    %192 = vector.load %arg10[%c0_93, %c0_94] : memref<1x1024xf32, #tpu.memory_space<vmem>>, vector<1x1024xf32>
    %193 = vector.broadcast %192 : vector<1x1024xf32> to vector<32x1024xf32>
    %194 = arith.mulf %191, %193 : vector<32x1024xf32>
    %c0_95 = arith.constant 0 : index
    %c0_96 = arith.constant 0 : index
    %195 = vector.load %arg7[%c0_95, %c0_96] : memref<1024x9xf32, #tpu.memory_space<vmem>>, vector<1024x9xf32>
    %cst_97 = arith.constant dense<0.000000e+00> : vector<32x9xf32>
    %196 = tpu.matmul %194, %195, %cst_97 {dimension_numbers = #tpu.dot_dimension_numbers<[1], [0], [0], [1], [0, 0, 1, 1], [], []>} : vector<32x1024xf32>, vector<1024x9xf32>, vector<32x9xf32> -> vector<32x9xf32>
    %c0_98 = arith.constant 0 : index
    %c0_99 = arith.constant 0 : index
    %c0_100 = arith.constant 0 : index
    %197 = vector.load %arg8[%c0_98, %c0_99, %c0_100] : memref<1x32x9xf32, #tpu.memory_space<vmem>>, vector<1x32x9xf32>
    %198 = vector.shape_cast %197 : vector<1x32x9xf32> to vector<32x9xf32>
    %199 = vector.shape_cast %196 : vector<32x9xf32> to vector<1x32x9xf32>
    tpu.vector_store %arg8[%c0_98, %c0_99, %c0_100], %199 {strides = array<i32>} : memref<1x32x9xf32, #tpu.memory_space<vmem>>, vector<1x32x9xf32>,
    return
  }
  func.func @transform_0(%arg0: i32) -> (i32, i32, i32) {
    %c0_i32 = arith.constant 0 : i32
    %c0_i32_0 = arith.constant 0 : i32
    %c0_i32_1 = arith.constant 0 : i32
    return %arg0, %c0_i32, %c0_i32_0 : i32, i32, i32
  }
  func.func @transform_1(%arg0: i32) -> (i32, i32, i32) {
    %c0_i32 = arith.constant 0 : i32
    %c0_i32_0 = arith.constant 0 : i32
    %c0_i32_1 = arith.constant 0 : i32
    return %arg0, %c0_i32, %c0_i32_0 : i32, i32, i32
  }
  func.func @transform_2(%arg0: i32) -> (i32, i32, i32) {
    %c0_i32 = arith.constant 0 : i32
    %c0_i32_0 = arith.constant 0 : i32
    %c0_i32_1 = arith.constant 0 : i32
    return %arg0, %c0_i32, %c0_i32_0 : i32, i32, i32
  }
  func.func @transform_3(%arg0: i32) -> (i32, i32, i32) {
    %c0_i32 = arith.constant 0 : i32
    %c0_i32_0 = arith.constant 0 : i32
    %c0_i32_1 = arith.constant 0 : i32
    return %arg0, %c0_i32, %c0_i32_0 : i32, i32, i32
  }
  func.func @transform_4(%arg0: i32) -> (i32, i32) {
    %c0_i32 = arith.constant 0 : i32
    %c0_i32_0 = arith.constant 0 : i32
    %c0_i32_1 = arith.constant 0 : i32
    return %c0_i32, %c0_i32_0 : i32, i32
  }
  func.func @transform_5(%arg0: i32) -> (i32, i32) {
    %c0_i32 = arith.constant 0 : i32
    %c0_i32_0 = arith.constant 0 : i32
    %c0_i32_1 = arith.constant 0 : i32
    return %c0_i32, %c0_i32_0 : i32, i32
  }
  func.func @transform_6(%arg0: i32) -> (i32, i32) {
    %c0_i32 = arith.constant 0 : i32
    %c0_i32_0 = arith.constant 0 : i32
    %c0_i32_1 = arith.constant 0 : i32
    return %c0_i32, %c0_i32_0 : i32, i32
  }
  func.func @transform_7(%arg0: i32) -> (i32, i32, i32) {
    %c0_i32 = arith.constant 0 : i32
    %c0_i32_0 = arith.constant 0 : i32
    %c0_i32_1 = arith.constant 0 : i32
    return %arg0, %c0_i32, %c0_i32_0 : i32, i32, i32
  }
}

</mosaic_0001>

<bundles_post_ra>
// kernel: sis_forward.1
= control target key start
LH: loop header
LB: loop body
LE: loop exit
PB: predicated region body
PF: predicated region fallthrough
CT: control target
= control target key end

     0   :  { %s3119_s24 = smov 0   ;;  %s4000_s0 = inlined_call_operand.vmem [shape: f32[2,16,1024], index: 0, kind: input, shape index: {}]   ;;  %s4001_s1 = inlined_call_operand.vmem [shape: f32[2,32,1024], index: 1, kind: input, shape index: {}]   ;;  %s4002_s2 = inlined_call_operand.vmem [shape: f32[2,32,128], index: 2, kind: input, shape index: {}]   ;;  %s4003_s3 = inlined_call_operand.vmem [shape: f32[2,1,128], index: 3, kind: input, shape index: {}]   ;;  %s4004_s4 = inlined_call_operand.vmem [shape: f32[32,32], index: 4, kind: input, shape index: {}]   ;;  %s4005_s5 = inlined_call_operand.vmem [shape: f32[16,32], index: 5, kind: input, shape index: {}]   ;;  %s4006_s6 = inlined_call_operand.vmem [shape: f32[1024,9], index: 6, kind: input, shape index: {}]   ;;  %s4007_s7 = inlined_call_operand.vmem [shape: f32[2,32,9], index: 7, kind: output, shape index: {}]  }
   0x1 LB: > { %s2376_s25 = sadd.s32 4294967295, %s3076_s24   ;;  %p2380_p0 = scmp.ge.s32.totalorder %s3076_s24, 1  ;;  %s3076_s24 = sphi %s3119_s24, %s17_s24  }
   0x2   : > { %p265_p1 = scmp.lt.s32.totalorder %s3076_s24, 3 }
   0x4   : > { %p266_p2 = pnand %p2380_p0, %p265_p1 }
   0x5   : > { %p310_p3 = scmp.lt.s32.totalorder (!%p266_p2), %s2376_s25, 1  ;;  %v3130_v0 = vld [vmem:[%s4004_s4] sm:$0xff] (!%p266_p2)  ;;  %vm362_vm0 = vcmask (!%p266_p2), 261120   ;;  %v3147_v7 = vld [vmem:[%s4004_s4 + $0x8] sm:$0xff] (!%p266_p2)  ;;  %v3152_v8 = vld [vmem:[%s4004_s4 + $0x10] sm:$0xff] (!%p266_p2)  ;;  %vm334_vm1 = vcmask (!%p266_p2), 1040384  }
   0x6   : > { %269 = sbr.rel (%p266_p2) target bundleno = 4461 (0x116d), region = 48  ;;  %2683 = vmatprep.mubr.msk.f32.mxu0 (!%p266_p2), %vm362_vm0, %v3130_v0  ;;  %2697 = vmatprep.mubr.msk.f32.mxu1 (!%p266_p2), %vm362_vm0, %v3130_v0  ;;  %v3161_v9 = vld [vmem:[%s4004_s4 + $0x18] sm:$0xff] (!%p266_p2)  ;;  %vm2283_vm3 = vcmask (!%p266_p2), 72704  }
   0xd   : > { %s4011_s25 = smov (!%p310_p3, %s2376_s25), 1 }
   0xe   : > { %s2433_s28 = sshll.u32 %s4011_s25, 5  ;;  %s2432_s15 = sshll.u32 %s4011_s25, 8 }
   0xf   : > { %s324_s8 = scalar_lea.vmem %s4002_s2, %s2433_s28  ;;  %s3171_s18 = scalar_lea.vmem %s4001_s1, %s2432_s15 }
  0x10   : > { %v354_v1 = vld [vmem:[%s324_s8] sm:$0xff]  ;;  %v355_v2 = vld [vmem:[%s324_s8 + $0x8] sm:$0xff]  ;;  %v356_v3 = vld [vmem:[%s324_s8 + $0x10] sm:$0xff]  ;;  %s327_s21 = scalar_lea.vmem %s4003_s3, %s4011_s25  ;;  %s2431_s29 = sshll.u32 %s4011_s25, 7 }
  0x11   : > { %v2787_v4 = vpack.c.bf16 %v355_v2, %v354_v1  ;;  %v357_v5 = vld [vmem:[%s324_s8 + $0x18] sm:$0xff]  ;;  %v359_v10 = vld [vmem:[%s3171_s18 + $0x40] sm:$0xff]  ;;  %v465_v24 = vld [vmem:[%s3171_s18 + $0x48] sm:$0xff]  ;;  %s3402_s9 = scalar_lea.vmem %s4000_s0, %s2431_s29  ;;  %s332_s8 = scalar_lea.vmem %s4007_s7, %s2433_s28 }
  0x12   : > { %v2791_v6 = vpack.c.bf16 %v357_v5, %v356_v3  ;;  %v358_v11 = vld [vmem:[%s3171_s18] sm:$0xff]  ;;  %v464_v25 = vld [vmem:[%s3171_s18 + $0x8] sm:$0xff]  ;;  %v558_v38 = vld [vmem:[%s3171_s18 + $0x50] sm:$0xff] }
  0x13   : > { %2788 = vmatprep.subr.bf16.mxu0 %v2787_v4  ;;  %v361_v16 = vld [vmem:[%s3171_s18 + $0xc0] sm:$0xff]  ;;  %v467_v30 = vld [vmem:[%s3171_s18 + $0xc8] sm:$0xff]  ;;  %v557_v39 = vld [vmem:[%s3171_s18 + $0x10] sm:$0xff] }
  0x14   : > { %2790 = vmatpush3.bf16.msra.mxu0 %v2787_v4  ;;  %v360_v17 = vld [vmem:[%s3171_s18 + $0x80] sm:$0xff]  ;;  %v466_v31 = vld [vmem:[%s3171_s18 + $0x88] sm:$0xff]  ;;  %v560_v44 = vld [vmem:[%s3171_s18 + $0xd0] sm:$0xff] }
  0x15   : > { %2792 = vmatprep.subr.bf16.mxu0 %v2791_v6  ;;  %v559_v45 = vld [vmem:[%s3171_s18 + $0x90] sm:$0xff]  ;;  %v3273_v52 = vld [vmem:[%s327_s21] sm:$0x1]  ;;  %v651_v54 = vld [vmem:[%s3171_s18 + $0x58] sm:$0xff] }
  0x16   : > { %v335_v53 = vsel %vm334_vm1, %v3273_v52, -inf  ;;  %v650_v55 = vld [vmem:[%s3171_s18 + $0x18] sm:$0xff] }
  0x17   : > { %336 = vmax.xlane.f32.xlu0 %v335_v53  ;;  %v653_v60 = vld [vmem:[%s3171_s18 + $0xd8] sm:$0xff]  ;;  %v838_v53 = vld [vmem:[%s3171_s18 + $0xa8] sm:$0xff] }
  0x18   : > { %2794 = vmatpush3.bf16.msra.mxu0 %v2791_v6  ;;  %v652_v61 = vld [vmem:[%s3171_s18 + $0x98] sm:$0xff] }
  0x1b   : > { %2684 = vmatmul.mubr.msk.f32.vlgmr.msra.gmra.mrb[0].mxu0 %vm362_vm0, %v3147_v7 }
  0x1c   : > { %2686 = vmatprep.mubr.msk.f32.mxu0 %vm362_vm0, %v3152_v8 }
  0x1f   : > { %2687 = vmatmul.mubr.msk.f32.gmra.mrb[2].mxu0 %vm362_vm0, %v3161_v9 }
  0x20   : > { %2711 = vmatprep.mubr.msk.f32.mxu0 %vm362_vm0, %v3130_v0 }
  0xa4   : > { %v3309_v5 = vpop.xlane.xlu0 %336 }
  0xa5   : > { %v338_v6 = vsub.f32 %v3273_v52, %v3309_v5 }
  0xee   : > { %v2685_v12 = vpop.f32.mrb[0].mxu0 }
  0xef   : > { %v3175_v13 = vadd.f32 %v2685_v12, %v359_v10  ;;  %v441_v14 = vpop.f32.mrb[1].mxu0  ;;  %v339_v10 = vmul.f32 1.442695, %v338_v6 }
  0xf0   : > { %v3177_v15 = vadd.f32 %v441_v14, %v358_v11  ;;  %v744_v14 = vld [vmem:[%s3171_s18 + $0x60] sm:$0xff] }
  0xf1   : > { %3020 = vpow2.f32 %v339_v10 }
  0xf2   : > { %v3183_v18 = vpack.c.bf16 %v3175_v13, %v3177_v15  ;;  %v2688_v19 = vpop.f32.mrb[2].mxu0 }
  0xf3   : > { %v3185_v20 = vadd.f32 %v2688_v19, %v361_v16  ;;  %v451_v21 = vpop.f32.mrb[3].mxu0  ;;  %v743_v16 = vld [vmem:[%s3171_s18 + $0x20] sm:$0xff] }
  0xf4   : > { %v3187_v22 = vadd.f32 %v451_v21, %v360_v17  ;;  %2796 = vmatprep.subr.bf16.mxu1 %v3183_v18 }
  0xf5   : > { %2798 = vmatpush3.bf16.msra.mxu1 %v3183_v18 }
  0xf6   : > { %v3193_v23 = vpack.c.bf16 %v3185_v20, %v3187_v22 }
  0xf8   : > { %2800 = vmatprep.subr.bf16.mxu1 %v3193_v23 }
  0xf9   : > { %2802 = vmatpush3.bf16.msra.mxu1 %v3193_v23 }
  0xfb   : > { %v3021_v11 = vpop.eup %3020 }
  0xfc   : > { %2698 = vmatmul.mubr.msk.f32.vlgmr.msra.gmra.mrb[0].mxu1 %vm362_vm0, %v3147_v7  ;;  %v341_v12 = vsel %vm334_vm1, %v3021_v11, 0.0  ;;  %v932_v11 = vld [vmem:[%s3171_s18 + $0xf0] sm:$0xff] }
  0xfd   : > { %2700 = vmatprep.mubr.msk.f32.mxu1 %vm362_vm0, %v3152_v8  ;;  %342 = vadd.xlane.f32.xlu0 %v341_v12  ;;  %v931_v12 = vld [vmem:[%s3171_s18 + $0xb0] sm:$0xff] }
 0x100   : > { %2701 = vmatmul.mubr.msk.f32.gmra.mrb[2].mxu1 %vm362_vm0, %v3161_v9 }
 0x101   : > { %2725 = vmatprep.mubr.msk.f32.mxu1 %vm362_vm0, %v3130_v0 }
 0x1cf   : > { %v2699_v26 = vpop.f32.mrb[0].mxu1 }
 0x1d0   : > { %v3207_v27 = vadd.f32 %v2699_v26, %v465_v24  ;;  %v534_v28 = vpop.f32.mrb[1].mxu1  ;;  %v745_v26 = vld [vmem:[%s3171_s18 + $0xa0] sm:$0xff] }
 0x1d1   : > { %v3209_v29 = vadd.f32 %v534_v28, %v464_v25  ;;  %v746_v25 = vld [vmem:[%s3171_s18 + $0xe0] sm:$0xff] }
 0x1d3   : > { %v3215_v32 = vpack.c.bf16 %v3207_v27, %v3209_v29  ;;  %v2702_v33 = vpop.f32.mrb[2].mxu1 }
 0x1d4   : > { %v3217_v34 = vadd.f32 %v2702_v33, %v467_v30  ;;  %v544_v35 = vpop.f32.mrb[3].mxu1 }
 0x1d5   : > { %v3219_v36 = vadd.f32 %v544_v35, %v466_v31  ;;  %2804 = vmatprep.subr.bf16.mxu0 %v3215_v32 }
 0x1d6   : > { %2806 = vmatpush3.bf16.msra.mxu0 %v3215_v32 }
 0x1d7   : > { %v3225_v37 = vpack.c.bf16 %v3217_v34, %v3219_v36 }
 0x1d9   : > { %2808 = vmatprep.subr.bf16.mxu0 %v3225_v37 }
 0x1da   : > { %2810 = vmatpush3.bf16.msra.mxu0 %v3225_v37 }
 0x1dd   : > { %2712 = vmatmul.mubr.msk.f32.vlgmr.msra.gmra.mrb[4].mxu0 %vm362_vm0, %v3147_v7 }
 0x1de   : > { %2714 = vmatprep.mubr.msk.f32.mxu0 %vm362_vm0, %v3152_v8 }
 0x1e1   : > { %2715 = vmatmul.mubr.msk.f32.gmra.mrb[6].mxu0 %vm362_vm0, %v3161_v9 }
 0x1e2   : > { %2739 = vmatprep.mubr.msk.f32.mxu0 %vm362_vm0, %v3130_v0 }
 0x2b0   : > { %v2713_v40 = vpop.f32.mrb[4].mxu0 }
 0x2b1   : > { %v3239_v41 = vadd.f32 %v2713_v40, %v558_v38  ;;  %v627_v42 = vpop.f32.mrb[5].mxu0  ;;  %v836_v40 = vld [vmem:[%s3171_s18 + $0x28] sm:$0xff] }
 0x2b2   : > { %v3241_v43 = vadd.f32 %v627_v42, %v557_v39  ;;  %v837_v39 = vld [vmem:[%s3171_s18 + $0x68] sm:$0xff] }
 0x2b4   : > { %v3247_v46 = vpack.c.bf16 %v3239_v41, %v3241_v43  ;;  %v2716_v47 = vpop.f32.mrb[6].mxu0 }
 0x2b5   : > { %v3249_v48 = vadd.f32 %v2716_v47, %v560_v44  ;;  %v637_v49 = vpop.f32.mrb[7].mxu0 }
 0x2b6   : > { %v3251_v50 = vadd.f32 %v637_v49, %v559_v45  ;;  %2812 = vmatprep.subr.bf16.mxu1 %v3247_v46  ;;  %v839_v49 = vld [vmem:[%s3171_s18 + $0xe8] sm:$0xff] }
 0x2b7   : > { %2814 = vmatpush3.bf16.msra.mxu1 %v3247_v46 }
 0x2b8   : > { %v3257_v51 = vpack.c.bf16 %v3249_v48, %v3251_v50 }
 0x2ba   : > { %2816 = vmatprep.subr.bf16.mxu1 %v3257_v51 }
 0x2bb   : > { %2818 = vmatpush3.bf16.msra.mxu1 %v3257_v51 }
 0x2be   : > { %2726 = vmatmul.mubr.msk.f32.vlgmr.msra.gmra.mrb[4].mxu1 %vm362_vm0, %v3147_v7 }
 0x2bf   : > { %2728 = vmatprep.mubr.msk.f32.mxu1 %vm362_vm0, %v3152_v8 }
 0x2c2   : > { %2729 = vmatmul.mubr.msk.f32.gmra.mrb[6].mxu1 %vm362_vm0, %v3161_v9 }
 0x2c3   : > { %2753 = vmatprep.mubr.msk.f32.mxu1 %vm362_vm0, %v3130_v0 }
 0x391   : > { %v2727_v56 = vpop.f32.mrb[4].mxu1 }
 0x392   : > { %v3279_v57 = vadd.f32 %v2727_v56, %v651_v54  ;;  %v720_v58 = vpop.f32.mrb[5].mxu1 }
 0x393   : > { %v3281_v59 = vadd.f32 %v720_v58, %v650_v55 }
 0x395   : > { %v3287_v62 = vpack.c.bf16 %v3279_v57, %v3281_v59  ;;  %v2730_v63 = vpop.f32.mrb[6].mxu1 }
 0x396   : > { %v3289_v1 = vadd.f32 %v2730_v63, %v653_v60  ;;  %v730_v2 = vpop.f32.mrb[7].mxu1 }
 0x397   : > { %v3291_v3 = vadd.f32 %v730_v2, %v652_v61  ;;  %2820 = vmatprep.subr.bf16.mxu0 %v3287_v62  ;;  %v3078_v61 = vmov 0.0  }
 0x398   : > { %2822 = vmatpush3.bf16.msra.mxu0 %v3287_v62 }
 0x399   : > { %v3297_v4 = vpack.c.bf16 %v3289_v1, %v3291_v3 }
 0x39b   : > { %2824 = vmatprep.subr.bf16.mxu0 %v3297_v4 }
 0x39c   : > { %2826 = vmatpush3.bf16.msra.mxu0 %v3297_v4 }
 0x39f   : > { %2740 = vmatmul.mubr.msk.f32.vlgmr.msra.gmra.mrb[8].mxu0 %vm362_vm0, %v3147_v7 }
 0x3a0   : > { %2742 = vmatprep.mubr.msk.f32.mxu0 %vm362_vm0, %v3152_v8 }
 0x3a3   : > { %2743 = vmatmul.mubr.msk.f32.gmra.mrb[10].mxu0 %vm362_vm0, %v3161_v9 }
 0x3a4   : > { %2767 = vmatprep.mubr.msk.f32.mxu0 %vm362_vm0, %v3130_v0 }
 0x472   : > { %v2741_v17 = vpop.f32.mrb[8].mxu0 }
 0x473   : > { %v3316_v19 = vadd.f32 %v2741_v17, %v744_v14  ;;  %v813_v21 = vpop.f32.mrb[9].mxu0 }
 0x474   : > { %v3318_v24 = vadd.f32 %v813_v21, %v743_v16 }
 0x476   : > { %v2827_v28 = vpack.c.bf16 %v3316_v19, %v3318_v24  ;;  %v2744_v30 = vpop.f32.mrb[10].mxu0 }
 0x477   : > { %v3324_v31 = vadd.f32 %v2744_v30, %v746_v25  ;;  %v823_v33 = vpop.f32.mrb[11].mxu0 }
 0x478   : > { %v3326_v35 = vadd.f32 %v823_v33, %v745_v26  ;;  %2828 = vmatprep.subr.bf16.mxu1 %v2827_v28  ;;  %v343_v26 = vpop.xlane.xlu0 %342  ;;  %v1461_v33 = vld [vmem:[%s3402_s9] sm:$0xff] }
 0x479   : > { %2830 = vmatpush3.bf16.msra.mxu1 %v2827_v28  ;;  %3022 = vlog2.f32 %v343_v26 }
 0x47a   : > { %v2831_v38 = vpack.c.bf16 %v3324_v31, %v3326_v35 }
 0x47c   : > { %2832 = vmatprep.subr.bf16.mxu1 %v2831_v38 }
 0x47d   : > { %2834 = vmatpush3.bf16.msra.mxu1 %v2831_v38 }
 0x480   : > { %2754 = vmatmul.mubr.msk.f32.vlgmr.msra.gmra.mrb[8].mxu1 %vm362_vm0, %v3147_v7 }
 0x481   : > { %2756 = vmatprep.mubr.msk.f32.mxu1 %vm362_vm0, %v3152_v8 }
 0x484   : > { %2757 = vmatmul.mubr.msk.f32.gmra.mrb[10].mxu1 %vm362_vm0, %v3161_v9 }
 0x485   : > { %2781 = vmatprep.mubr.msk.f32.mxu1 %vm362_vm0, %v3130_v0 }
 0x553   : > { %v2755_v42 = vpop.f32.mrb[8].mxu1 }
 0x554   : > { %v3340_v44 = vadd.f32 %v2755_v42, %v837_v39  ;;  %v906_v45 = vpop.f32.mrb[9].mxu1  ;;  %v1462_v39 = vld [vmem:[%s3402_s9 + $0x8] sm:$0xff] }
 0x555   : > { %v3342_v47 = vadd.f32 %v906_v45, %v836_v40  ;;  %v1469_v40 = vld [vmem:[%s3402_s9 + $0x40] sm:$0xff]  ;;  %v1470_v45 = vld [vmem:[%s3402_s9 + $0x48] sm:$0xff] }
 0x557   : > { %v2835_v54 = vpack.c.bf16 %v3340_v44, %v3342_v47  ;;  %v2758_v55 = vpop.f32.mrb[10].mxu1 }
 0x558   : > { %v3348_v56 = vadd.f32 %v2758_v55, %v839_v49  ;;  %v916_v58 = vpop.f32.mrb[11].mxu1 }
 0x559   : > { %v3350_v60 = vadd.f32 %v916_v58, %v838_v53  ;;  %2836 = vmatprep.subr.bf16.mxu0 %v2835_v54 }
 0x55a   : > { %2838 = vmatpush3.bf16.msra.mxu0 %v2835_v54 }
 0x55b   : > { %v2839_v0 = vpack.c.bf16 %v3348_v56, %v3350_v60 }
 0x55d   : > { %2840 = vmatprep.subr.bf16.mxu0 %v2839_v0 }
 0x55e   : > { %2842 = vmatpush3.bf16.msra.mxu0 %v2839_v0 }
 0x55f   : > { %2852 = vmatprep.subr.bf16.mxu0 %v3215_v32  ;;  %v3368_v32 = vld [vmem:[%s4005_s5] sm:$0xff] }
 0x561   : > { %2768 = vmatmul.mubr.msk.f32.vlgmr.msra.gmra.mrb[12].mxu0 %vm362_vm0, %v3147_v7 }
 0x562   : > { %2854 = vmatpush1.bf16.msra.mxu0 %v3183_v18  ;;  %2770 = vmatprep.mubr.msk.f32.mxu0 %vm362_vm0, %v3152_v8  ;;  %v3376_v18 = vld [vmem:[%s4005_s5 + $0x8] sm:$0xff] }
 0x563   : > { %2856 = vmatprep.subr.bf16.mxu0 %v3225_v37  ;;  %v929_v37 = vld [vmem:[%s3171_s18 + $0x30] sm:$0xff] }
 0x565   : > { %2771 = vmatmul.mubr.msk.f32.gmra.mrb[14].mxu0 %vm362_vm0, %v3161_v9 }
 0x566   : > { %2858 = vmatpush1.bf16.msra.mxu0 %v3193_v23  ;;  %1217 = vmatprep.mubr.f32.mxu0 %v3078_v61  ;;  %v930_v23 = vld [vmem:[%s3171_s18 + $0x70] sm:$0xff] }
 0x567   : > { %2868 = vmatprep.subr.bf16.mxu0 %v2835_v54 }
 0x569   : > { %2421 = vmatmul.mubr.msk.f32.vlgmr.msra.gmra.mrb[16].mxu0 %vm362_vm0, %v3368_v32 }
 0x56a   : > { %2870 = vmatpush1.bf16.msra.mxu0 %v2827_v28  ;;  %1223 = vmatprep.mubr.f32.mxu0 %v3078_v61 }
 0x56b   : > { %2872 = vmatprep.subr.bf16.mxu0 %v2839_v0 }
 0x56d   : > { %2422 = vmatmul.mubr.msk.f32.gmra.mrb[18].mxu0 %vm362_vm0, %v3376_v18 }
 0x56e   : > { %2874 = vmatpush1.bf16.msra.mxu0 %v2831_v38  ;;  %1371 = vmatprep.mubr.f32.mxu0 %v3078_v61 }
 0x571   : > { %2425 = vmatmul.mubr.msk.f32.vlgmr.msra.gmra.mrb[20].mxu0 %vm362_vm0, %v3368_v32 }
 0x572   : > { %1377 = vmatprep.mubr.f32.mxu0 %v3078_v61 }
 0x575   : > { %2426 = vmatmul.mubr.msk.f32.gmra.mrb[22].mxu0 %vm362_vm0, %v3376_v18 }
 0x634   : > { %v2769_v63 = vpop.f32.mrb[12].mxu0 }
 0x635   : > { %v3388_v2 = vadd.f32 %v2769_v63, %v930_v23  ;;  %v999_v6 = vpop.f32.mrb[13].mxu0 }
 0x636   : > { %v3391_v10 = vadd.f32 %v999_v6, %v929_v37 }
 0x638   : > { %v3397_v14 = vpack.c.bf16 %v3388_v2, %v3391_v10  ;;  %v2772_v16 = vpop.f32.mrb[14].mxu0 }
 0x639   : > { %v3404_v17 = vadd.f32 %v2772_v16, %v932_v11  ;;  %v1009_v21 = vpop.f32.mrb[15].mxu0 }
 0x63a   : > { %v3406_v25 = vadd.f32 %v1009_v21, %v931_v12  ;;  %2844 = vmatprep.subr.bf16.mxu1 %v3397_v14 }
 0x63b   : > { %2846 = vmatpush3.bf16.msra.mxu1 %v3397_v14 }
 0x63c   : > { %v3412_v28 = vpack.c.bf16 %v3404_v17, %v3406_v25  ;;  %v1219_v30 = vpop.f32.mrb[16].mxu0 }
 0x63d   : > { %v1221_v38 = vpop.f32.mrb[17].mxu0  ;;  %v1477_v42 = vsub.f32 %v1219_v30, %v1461_v33 }
 0x63e   : > { %2848 = vmatprep.subr.bf16.mxu1 %v3412_v28  ;;  %v1478_v49 = vsub.f32 %v1221_v38, %v1462_v39 }
 0x63f   : > { %2850 = vmatpush3.bf16.msra.mxu1 %v3412_v28  ;;  %v1493_v0 = vmul.f32 %v1477_v42, %v1477_v42 }
 0x640   : > { %v1225_v53 = vpop.f32.mrb[18].mxu0  ;;  %2860 = vmatprep.subr.bf16.mxu1 %v3287_v62  ;;  %v1494_v37 = vmul.f32 %v1478_v49, %v1478_v49  ;;  %v1022_v49 = vld [vmem:[%s3171_s18 + $0x38] sm:$0xff] }
 0x641   : > { %v1485_v54 = vsub.f32 %v1225_v53, %v1469_v40  ;;  %v1227_v55 = vpop.f32.mrb[19].mxu0 }
 0x642   : > { %v1486_v58 = vsub.f32 %v1227_v55, %v1470_v45  ;;  %2782 = vmatmul.mubr.msk.f32.vlgmr.msra.gmra.mrb[12].mxu1 %vm362_vm0, %v3147_v7  ;;  %v3023_v7 = vpop.eup %3022  ;;  %v1023_v45 = vld [vmem:[%s3171_s18 + $0x78] sm:$0xff] }
 0x643   : > { %v1501_v23 = vmul.f32 %v1485_v54, %v1485_v54  ;;  %2862 = vmatpush1.bf16.msra.mxu1 %v3247_v46  ;;  %2784 = vmatprep.mubr.msk.f32.mxu1 %vm362_vm0, %v3152_v8  ;;  %v345_v8 = vmul.f32 0.6931472, %v3023_v7 }
 0x644   : > { %v1502_v63 = vmul.f32 %v1486_v58, %v1486_v58  ;;  %2864 = vmatprep.subr.bf16.mxu1 %v3297_v4  ;;  %v1025_v58 = vld [vmem:[%s3171_s18 + $0xf8] sm:$0xff] }
 0x645   : > { %v1509_v6 = vadd.f32 %v1501_v23, %v1493_v0  ;;  %v1024_v0 = vld [vmem:[%s3171_s18 + $0xb8] sm:$0xff] }
 0x646   : > { %v1516_v11 = vadd.f32 %v1502_v63, %v1494_v37  ;;  %2785 = vmatmul.mubr.msk.f32.gmra.mrb[14].mxu1 %vm362_vm0, %v3161_v9  ;;  %v346_v9 = vadd.f32 %v345_v8, %v3309_v5 }
 0x647   : > { %v1510_v62 = vrot.slane %v1509_v6, 4  ;;  %2866 = vmatpush1.bf16.msra.mxu1 %v3257_v51  ;;  %1294 = vmatprep.mubr.f32.mxu1 %v3078_v61 }
 0x648   : > { %v347_v21 = vsub.f32 %v3273_v52, %v346_v9  ;;  %v1585_v9 = vlaneseq }
 0x649   : > { %v1511_v12 = vadd.f32 %v1510_v62, %v1509_v6 }
 0x64a   : > { %2423 = vmatmul.mubr.msk.f32.vlgmr.msra.gmra.mrb[16].mxu1 %vm362_vm0, %v3368_v32  ;;  %vm3465_vm2 = vcmp.lt.s32.totalorder %v1585_v9, 128 }
 0x64b   : > { %v1512_v46 = vrot.slane %v1511_v12, 2  ;;  %1300 = vmatprep.mubr.f32.mxu1 %v3078_v61 }
 0x64d   : > { %v1513_v4 = vadd.f32 %v1512_v46, %v1511_v12  ;;  %v1517_v12 = vrot.slane %v1516_v11, 4 }
 0x64e   : > { %2424 = vmatmul.mubr.msk.f32.gmra.mrb[18].mxu1 %vm362_vm0, %v3376_v18 }
 0x64f   : > { %v1514_v16 = vrot.slane %v1513_v4, 1  ;;  %1448 = vmatprep.mubr.f32.mxu1 %v3078_v61  ;;  %v1518_v8 = vadd.f32 %v1517_v12, %v1516_v11 }
 0x651   : > { %v1515_v51 = vadd.f32 %v1514_v16, %v1513_v4  ;;  %v1519_v4 = vrot.slane %v1518_v8, 2 }
 0x653   : > { %v1565_v26 = vmul.f32 -0.5, %v1515_v51 }
 0x655   : > { %v1573_v30 = vadd.f32 %v1565_v26, %v347_v21 }
 0x657   : > { %v1574_v33 = vsel %vm334_vm1, %v1573_v30, -inf }
 0x658   : > { %1575 = vmax.xlane.f32.xlu1 %v1574_v33 }
 0x6e5   : > { %v1576_v38 = vpop.xlane.xlu1 %1575 }
 0x6e6   : > { %v1577_v39 = vsub.f32 %v1573_v30, %v1576_v38 }
 0x6e8   : > { %v1578_v40 = vmul.f32 1.442695, %v1577_v39 }
 0x6ea   : > { %3024 = vpow2.f32 %v1578_v40 }
 0x6f4   : > { %v3025_v5 = vpop.eup %3024 }
 0x6f5   : > { %v1580_v42 = vsel %vm334_vm1, %v3025_v5, 0.0 }
 0x6f6   : > { %1581 = vadd.xlane.f32.xlu1 %v1580_v42 }
 0x715   : > { %v2783_v53 = vpop.f32.mrb[12].mxu1 }
 0x716   : > { %v3443_v54 = vadd.f32 %v2783_v53, %v1023_v45  ;;  %v1092_v52 = vpop.f32.mrb[13].mxu1  ;;  %v1463_v45 = vld [vmem:[%s3402_s9 + $0x10] sm:$0xff] }
 0x717   : > { %v3445_v55 = vadd.f32 %v1092_v52, %v1022_v49  ;;  %v1464_v49 = vld [vmem:[%s3402_s9 + $0x18] sm:$0xff]  ;;  %v1471_v53 = vld [vmem:[%s3402_s9 + $0x50] sm:$0xff] }
 0x719   : > { %v2875_v23 = vpack.c.bf16 %v3443_v54, %v3445_v55  ;;  %v2786_v37 = vpop.f32.mrb[14].mxu1 }
 0x71a   : > { %v3451_v63 = vadd.f32 %v2786_v37, %v1025_v58  ;;  %v1102_v6 = vpop.f32.mrb[15].mxu1 }
 0x71b   : > { %v3453_v62 = vadd.f32 %v1102_v6, %v1024_v0  ;;  %2876 = vmatprep.subr.bf16.mxu1 %v2875_v23 }
 0x71c   : > { %2878 = vmatpush1.bf16.msra.mxu1 %v3397_v14  ;;  %v1520_v14 = vadd.f32 %v1519_v4, %v1518_v8 }
 0x71d   : > { %v2879_v7 = vpack.c.bf16 %v3451_v63, %v3453_v62  ;;  %v1296_v42 = vpop.f32.mrb[16].mxu1 }
 0x71e   : > { %v1521_v16 = vrot.slane %v1520_v14, 1  ;;  %v1479_v52 = vsub.f32 %v1296_v42, %v1463_v45  ;;  %v1298_v58 = vpop.f32.mrb[17].mxu1 }
 0x71f   : > { %2880 = vmatprep.subr.bf16.mxu1 %v2879_v7  ;;  %v1480_v0 = vsub.f32 %v1298_v58, %v1464_v49 }
 0x720   : > { %2882 = vmatpush1.bf16.msra.mxu1 %v3412_v28  ;;  %v1522_v51 = vadd.f32 %v1521_v16, %v1520_v14  ;;  %v1495_v37 = vmul.f32 %v1479_v52, %v1479_v52 }
 0x721   : > { %v1302_v23 = vpop.f32.mrb[18].mxu1  ;;  %v1496_v12 = vmul.f32 %v1480_v0, %v1480_v0 }
 0x722   : > { %v1566_v26 = vmul.f32 -0.5, %v1522_v51  ;;  %v1487_v6 = vsub.f32 %v1302_v23, %v1471_v53  ;;  %v1304_v7 = vpop.f32.mrb[19].mxu1 }
 0x723   : > { %2427 = vmatmul.mubr.msk.f32.vlgmr.msra.gmra.mrb[20].mxu1 %vm362_vm0, %v3368_v32  ;;  %v1911_v32 = vld [vmem:[%s4006_s6 + $0x300] sm:$0xff] }
 0x724   : > { %1454 = vmatprep.mubr.f32.mxu1 %v3078_v61  ;;  %v1503_v8 = vmul.f32 %v1487_v6, %v1487_v6 }
 0x727   : > { %2428 = vmatmul.mubr.msk.f32.gmra.mrb[22].mxu1 %vm362_vm0, %v3376_v18 }
 0x783   : > { %v1582_v46 = vpop.xlane.xlu1 %1581 }
 0x784   : > { %3026 = vrcp.f32 %v1582_v46 }
 0x785   : > { %3028 = vlog2.f32 %v1582_v46  ;;  %v1523_v46 = vadd.f32 %v1503_v8, %v1495_v37 }
 0x78e   : > { %v3027_v28 = vpop.eup %3026 }
 0x78f   : > { %v3029_v61 = vpop.eup %3028  ;;  %v1584_v18 = vmul.f32 %v3027_v28, %v3025_v5  ;;  %v1472_v5 = vld [vmem:[%s3402_s9 + $0x58] sm:$0xff] }
 0x790   : > { %v1591_v11 = vmul.f32 0.6931472, %v3029_v61 }
 0x791   : > { %1589 = vst.msk [vmem:[#allocation3] sm:$0x1] %vm3465_vm2, %v1584_v18 }
 0x792   : > { %v1592_v21 = vadd.f32 %v1591_v11, %v1576_v38  ;;  %v1488_v38 = vsub.f32 %v1304_v7, %v1472_v5  ;;  %v1524_v11 = vrot.slane %v1523_v46, 4 }
 0x794   : > { %v1593_v33 = vsub.f32 %v1573_v30, %v1592_v21  ;;  %v1504_v30 = vmul.f32 %v1488_v38, %v1488_v38  ;;  %v1525_v51 = vadd.f32 %v1524_v11, %v1523_v46 }
 0x796   : > { %v1594_v39 = vadd.f32 %v1593_v33, %v1566_v26  ;;  %v1530_v4 = vadd.f32 %v1504_v30, %v1496_v12  ;;  %v1526_v26 = vrot.slane %v1525_v51, 2 }
 0x798   : > { %v1595_v40 = vsel %vm334_vm1, %v1594_v39, -inf  ;;  %v1527_v33 = vadd.f32 %v1526_v26, %v1525_v51  ;;  %v1531_v30 = vrot.slane %v1530_v4, 4 }
 0x799   : > { %1596 = vmax.xlane.f32.xlu0 %v1595_v40 }
 0x79a   : > { %v1528_v40 = vrot.slane %v1527_v33, 1  ;;  %v1532_v46 = vadd.f32 %v1531_v30, %v1530_v4 }
 0x79c   : > { %v1529_v52 = vadd.f32 %v1528_v40, %v1527_v33 }
 0x79e   : > { %v1567_v5 = vmul.f32 -0.5, %v1529_v52  ;;  %v1473_v52 = vld [vmem:[%s3402_s9 + $0x60] sm:$0xff] }
 0x826   : > { %v1597_v14 = vpop.xlane.xlu0 %1596 }
 0x827   : > { %v1598_v16 = vsub.f32 %v1594_v39, %v1597_v14 }
 0x829   : > { %v1599_v28 = vmul.f32 1.442695, %v1598_v16 }
 0x82b   : > { %3030 = vpow2.f32 %v1599_v28  ;;  %v1533_v28 = vrot.slane %v1532_v46, 2 }
 0x835   : > { %v3031_v61 = vpop.eup %3030 }
 0x836   : > { %v1601_v18 = vsel %vm334_vm1, %v3031_v61, 0.0 }
 0x837   : > { %1602 = vadd.xlane.f32.xlu1 %v1601_v18 }
 0x8c4   : > { %v1603_v21 = vpop.xlane.xlu1 %1602 }
 0x8c5   : > { %3032 = vrcp.f32 %v1603_v21 }
 0x8c6   : > { %3034 = vlog2.f32 %v1603_v21 }
 0x8cf   : > { %v3033_v42 = vpop.eup %3032 }
 0x8d0   : > { %v3035_v45 = vpop.eup %3034  ;;  %v1605_v49 = vmul.f32 %v3033_v42, %v3031_v61 }
 0x8d1   : > { %v1608_v53 = vmul.f32 0.6931472, %v3035_v45  ;;  %v1373_v45 = vpop.f32.mrb[20].mxu0 }
 0x8d2   : > { %1606 = vst.msk [vmem:[#allocation3 + $0x1] sm:$0x1] %vm3465_vm2, %v1605_v49  ;;  %v1465_v49 = vld [vmem:[%s3402_s9 + $0x20] sm:$0xff] }
 0x8d3   : > { %v1609_v58 = vadd.f32 %v1608_v53, %v1597_v14  ;;  %v1466_v53 = vld [vmem:[%s3402_s9 + $0x28] sm:$0xff] }
 0x8d5   : > { %v1610_v0 = vsub.f32 %v1594_v39, %v1609_v58  ;;  %v1534_v39 = vadd.f32 %v1533_v28, %v1532_v46  ;;  %v1481_v58 = vsub.f32 %v1373_v45, %v1465_v49 }
 0x8d7   : > { %v1611_v23 = vadd.f32 %v1610_v0, %v1567_v5  ;;  %v1535_v14 = vrot.slane %v1534_v39, 1  ;;  %v1375_v5 = vpop.f32.mrb[21].mxu0  ;;  %v1474_v0 = vld [vmem:[%s3402_s9 + $0x68] sm:$0xff] }
 0x8d9   : > { %v1612_v37 = vsel %vm334_vm1, %v1611_v23, -inf  ;;  %v1536_v21 = vadd.f32 %v1535_v14, %v1534_v39 }
 0x8da   : > { %1613 = vmax.xlane.f32.xlu0 %v1612_v37  ;;  %v1482_v37 = vsub.f32 %v1375_v5, %v1466_v53 }
 0x8db   : > { %v1568_v4 = vmul.f32 -0.5, %v1536_v21 }
 0x8dc   : > { %v1498_v30 = vmul.f32 %v1482_v37, %v1482_v37 }
 0x967   : > { %v1614_v6 = vpop.xlane.xlu0 %1613 }
 0x968   : > { %v1615_v7 = vsub.f32 %v1611_v23, %v1614_v6 }
 0x96a   : > { %v1616_v12 = vmul.f32 1.442695, %v1615_v7  ;;  %v1379_v7 = vpop.f32.mrb[22].mxu0 }
 0x96c   : > { %3036 = vpow2.f32 %v1616_v12  ;;  %v1497_v12 = vmul.f32 %v1481_v58, %v1481_v58 }
 0x976   : > { %v3037_v38 = vpop.eup %3036 }
 0x977   : > { %v1618_v8 = vsel %vm334_vm1, %v3037_v38, 0.0 }
 0x978   : > { %1619 = vadd.xlane.f32.xlu1 %v1618_v8  ;;  %v1381_v8 = vpop.f32.mrb[23].mxu0 }
 0xa05   : > { %v1620_v16 = vpop.xlane.xlu1 %1619 }
 0xa06   : > { %3038 = vrcp.f32 %v1620_v16 }
 0xa07   : > { %3040 = vlog2.f32 %v1620_v16 }
 0xa10   : > { %v3039_v61 = vpop.eup %3038 }
 0xa11   : > { %v3041_v18 = vpop.eup %3040  ;;  %v1622_v11 = vmul.f32 %v3039_v61, %v3037_v38  ;;  %v1489_v38 = vsub.f32 %v1379_v7, %v1473_v52 }
 0xa12   : > { %v1625_v51 = vmul.f32 0.6931472, %v3041_v18 }
 0xa13   : > { %1623 = vst.msk [vmem:[#allocation3 + $0x2] sm:$0x1] %vm3465_vm2, %v1622_v11  ;;  %v1505_v46 = vmul.f32 %v1489_v38, %v1489_v38 }
 0xa14   : > { %v1626_v26 = vadd.f32 %v1625_v51, %v1614_v6  ;;  %v1490_v6 = vsub.f32 %v1381_v8, %v1474_v0 }
 0xa15   : > { %v1537_v16 = vadd.f32 %v1505_v46, %v1497_v12 }
 0xa16   : > { %v1627_v33 = vsub.f32 %v1611_v23, %v1626_v26  ;;  %v1506_v23 = vmul.f32 %v1490_v6, %v1490_v6 }
 0xa17   : > { %v1538_v51 = vrot.slane %v1537_v16, 4 }
 0xa18   : > { %v1628_v40 = vadd.f32 %v1627_v33, %v1568_v4  ;;  %v1544_v28 = vadd.f32 %v1506_v23, %v1498_v30 }
 0xa19   : > { %v1539_v21 = vadd.f32 %v1538_v51, %v1537_v16 }
 0xa1a   : > { %v1629_v42 = vsel %vm334_vm1, %v1628_v40, -inf  ;;  %v1545_v23 = vrot.slane %v1544_v28, 4 }
 0xa1b   : > { %1630 = vmax.xlane.f32.xlu0 %v1629_v42  ;;  %v1540_v4 = vrot.slane %v1539_v21, 2 }
 0xa1c   : > { %v1546_v16 = vadd.f32 %v1545_v23, %v1544_v28 }
 0xa1d   : > { %v1541_v33 = vadd.f32 %v1540_v4, %v1539_v21 }
 0xa1f   : > { %v1542_v42 = vrot.slane %v1541_v33, 1 }
 0xa21   : > { %v1543_v58 = vadd.f32 %v1542_v42, %v1541_v33 }
 0xa23   : > { %v1569_v0 = vmul.f32 -0.5, %v1543_v58  ;;  %v1475_v58 = vld [vmem:[%s3402_s9 + $0x70] sm:$0xff] }
 0xaa8   : > { %v1631_v39 = vpop.xlane.xlu0 %1630 }
 0xaa9   : > { %v1632_v14 = vsub.f32 %v1628_v40, %v1631_v39 }
 0xaab   : > { %v1633_v61 = vmul.f32 1.442695, %v1632_v14 }
 0xaad   : > { %3042 = vpow2.f32 %v1633_v61  ;;  %v1547_v61 = vrot.slane %v1546_v16, 2 }
 0xab7   : > { %v3043_v18 = vpop.eup %3042 }
 0xab8   : > { %v1635_v11 = vsel %vm334_vm1, %v3043_v18, 0.0 }
 0xab9   : > { %1636 = vadd.xlane.f32.xlu1 %v1635_v11 }
 0xb46   : > { %v1637_v26 = vpop.xlane.xlu1 %1636 }
 0xb47   : > { %3044 = vrcp.f32 %v1637_v26 }
 0xb48   : > { %3046 = vlog2.f32 %v1637_v26 }
 0xb51   : > { %v3045_v45 = vpop.eup %3044 }
 0xb52   : > { %v3047_v49 = vpop.eup %3046  ;;  %v1639_v53 = vmul.f32 %v3045_v45, %v3043_v18 }
 0xb53   : > { %v1642_v52 = vmul.f32 0.6931472, %v3047_v49  ;;  %v1450_v49 = vpop.f32.mrb[20].mxu1 }
 0xb54   : > { %1640 = vst.msk [vmem:[#allocation3 + $0x3] sm:$0x1] %vm3465_vm2, %v1639_v53  ;;  %v1467_v53 = vld [vmem:[%s3402_s9 + $0x30] sm:$0xff] }
 0xb55   : > { %v1643_v5 = vadd.f32 %v1642_v52, %v1631_v39  ;;  %v1468_v52 = vld [vmem:[%s3402_s9 + $0x38] sm:$0xff] }
 0xb57   : > { %v1644_v37 = vsub.f32 %v1628_v40, %v1643_v5  ;;  %v1548_v40 = vadd.f32 %v1547_v61, %v1546_v16  ;;  %v1483_v5 = vsub.f32 %v1450_v49, %v1467_v53 }
 0xb59   : > { %v1645_v7 = vadd.f32 %v1644_v37, %v1569_v0  ;;  %v1549_v39 = vrot.slane %v1548_v40, 1  ;;  %v1452_v0 = vpop.f32.mrb[21].mxu1  ;;  %v1476_v37 = vld [vmem:[%s3402_s9 + $0x78] sm:$0xff] }
 0xb5b   : > { %v1646_v12 = vsel %vm334_vm1, %v1645_v7, -inf  ;;  %v1550_v26 = vadd.f32 %v1549_v39, %v1548_v40 }
 0xb5c   : > { %1647 = vmax.xlane.f32.xlu0 %v1646_v12  ;;  %v1484_v12 = vsub.f32 %v1452_v0, %v1468_v52 }
 0xb5d   : > { %v1570_v28 = vmul.f32 -0.5, %v1550_v26 }
 0xb5e   : > { %v1500_v23 = vmul.f32 %v1484_v12, %v1484_v12 }
 0xbe9   : > { %v1648_v38 = vpop.xlane.xlu0 %1647 }
 0xbea   : > { %v1649_v8 = vsub.f32 %v1645_v7, %v1648_v38 }
 0xbec   : > { %v1650_v30 = vmul.f32 1.442695, %v1649_v8  ;;  %v1456_v8 = vpop.f32.mrb[22].mxu1 }
 0xbee   : > { %3048 = vpow2.f32 %v1650_v30  ;;  %v1499_v30 = vmul.f32 %v1483_v5, %v1483_v5 }
 0xbf8   : > { %v3049_v6 = vpop.eup %3048 }
 0xbf9   : > { %v1652_v46 = vsel %vm334_vm1, %v3049_v6, 0.0 }
 0xbfa   : > { %1653 = vadd.xlane.f32.xlu1 %v1652_v46  ;;  %v1458_v46 = vpop.f32.mrb[23].mxu1 }
 0xc87   : > { %v1654_v14 = vpop.xlane.xlu1 %1653 }
 0xc88   : > { %3050 = vrcp.f32 %v1654_v14 }
 0xc89   : > { %3052 = vlog2.f32 %v1654_v14 }
 0xc92   : > { %v3051_v18 = vpop.eup %3050 }
 0xc93   : > { %v3053_v11 = vpop.eup %3052  ;;  %v1656_v51 = vmul.f32 %v3051_v18, %v3049_v6  ;;  %v1491_v6 = vsub.f32 %v1456_v8, %v1475_v58 }
 0xc94   : > { %v1659_v21 = vmul.f32 0.6931472, %v3053_v11 }
 0xc95   : > { %1657 = vst.msk [vmem:[#allocation3 + $0x4] sm:$0x1] %vm3465_vm2, %v1656_v51  ;;  %v1507_v16 = vmul.f32 %v1491_v6, %v1491_v6 }
 0xc96   : > { %v1660_v4 = vadd.f32 %v1659_v21, %v1648_v38  ;;  %v1492_v38 = vsub.f32 %v1458_v46, %v1476_v37 }
 0xc97   : > { %v1551_v14 = vadd.f32 %v1507_v16, %v1499_v30 }
 0xc98   : > { %v1661_v33 = vsub.f32 %v1645_v7, %v1660_v4  ;;  %v1508_v7 = vmul.f32 %v1492_v38, %v1492_v38 }
 0xc99   : > { %v1552_v21 = vrot.slane %v1551_v14, 4 }
 0xc9a   : > { %v1662_v42 = vadd.f32 %v1661_v33, %v1570_v28  ;;  %v1558_v61 = vadd.f32 %v1508_v7, %v1500_v23 }
 0xc9b   : > { %v1553_v26 = vadd.f32 %v1552_v21, %v1551_v14 }
 0xc9c   : > { %v1663_v45 = vsel %vm334_vm1, %v1662_v42, -inf  ;;  %v1559_v7 = vrot.slane %v1558_v61, 4 }
 0xc9d   : > { %1664 = vmax.xlane.f32.xlu0 %v1663_v45  ;;  %v1554_v28 = vrot.slane %v1553_v26, 2 }
 0xc9e   : > { %v1560_v14 = vadd.f32 %v1559_v7, %v1558_v61  ;;  %v1865_v7 = vld [vmem:[%s4006_s6 + $0x190] sm:$0xff] }
 0xc9f   : > { %v1555_v33 = vadd.f32 %v1554_v28, %v1553_v26 }
 0xca1   : > { %v1556_v45 = vrot.slane %v1555_v33, 1 }
 0xca3   : > { %v1557_v5 = vadd.f32 %v1556_v45, %v1555_v33 }
 0xca5   : > { %v1571_v37 = vmul.f32 -0.5, %v1557_v5 }
 0xd2a   : > { %v1665_v40 = vpop.xlane.xlu0 %1664 }
 0xd2b   : > { %v1666_v39 = vsub.f32 %v1662_v42, %v1665_v40 }
 0xd2d   : > { %v1667_v18 = vmul.f32 1.442695, %v1666_v39 }
 0xd2f   : > { %3054 = vpow2.f32 %v1667_v18  ;;  %v1561_v18 = vrot.slane %v1560_v14, 2 }
 0xd39   : > { %v3055_v11 = vpop.eup %3054 }
 0xd3a   : > { %v1669_v51 = vsel %vm334_vm1, %v3055_v11, 0.0 }
 0xd3b   : > { %1670 = vadd.xlane.f32.xlu1 %v1669_v51 }
 0xdc8   : > { %v1671_v4 = vpop.xlane.xlu1 %1670 }
 0xdc9   : > { %3056 = vrcp.f32 %v1671_v4 }
 0xdca   : > { %3058 = vlog2.f32 %v1671_v4 }
 0xdd3   : > { %v3057_v49 = vpop.eup %3056 }
 0xdd4   : > { %v3059_v53 = vpop.eup %3058  ;;  %v1673_v52 = vmul.f32 %v3057_v49, %v3055_v11 }
 0xdd5   : > { %v1676_v58 = vmul.f32 0.6931472, %v3059_v53  ;;  %v1831_v53 = vld [vmem:[%s4006_s6 + $0x80] sm:$0xff] }
 0xdd6   : > { %1674 = vst.msk [vmem:[#allocation3 + $0x5] sm:$0x1] %vm3465_vm2, %v1673_v52  ;;  %v1832_v52 = vld [vmem:[%s4006_s6 + $0x88] sm:$0xff] }
 0xdd7   : > { %v1677_v0 = vadd.f32 %v1676_v58, %v1665_v40  ;;  %v1562_v40 = vadd.f32 %v1561_v18, %v1560_v14  ;;  %v1863_v58 = vld [vmem:[%s4006_s6 + $0x180] sm:$0xff]  ;;  %v2883_v5 = vpack.c.bf16 %v1832_v52, %v1831_v53  ;;  %v1866_v14 = vld [vmem:[%s4006_s6 + $0x198] sm:$0xff]  ;;  %v1836_v52 = vld [vmem:[%s4006_s6 + $0xa8] sm:$0xff] }
 0xdd8   : > { %v2919_v18 = vpack.c.bf16 %v1866_v14, %v1865_v7  ;;  %v1835_v53 = vld [vmem:[%s4006_s6 + $0xa0] sm:$0xff]  ;;  %v1870_v14 = vld [vmem:[%s4006_s6 + $0x1b8] sm:$0xff] }
 0xdd9   : > { %v1678_v12 = vsub.f32 %v1662_v42, %v1677_v0  ;;  %v1563_v42 = vrot.slane %v1562_v40, 1  ;;  %v1864_v0 = vld [vmem:[%s4006_s6 + $0x188] sm:$0xff]  ;;  %2884 = vmatprep.subr.bf16.mxu0 %v2883_v5 }
 0xdda   : > { %v1868_v5 = vld [vmem:[%s4006_s6 + $0x1a8] sm:$0xff] }
 0xddb   : > { %v1679_v8 = vadd.f32 %v1678_v12, %v1571_v37  ;;  %v1564_v4 = vadd.f32 %v1563_v42, %v1562_v40  ;;  %v1815_v37 = vld [vmem:[%s4006_s6] sm:$0xff]  ;;  %v1816_v12 = vld [vmem:[%s4006_s6 + $0x8] sm:$0xff]  ;;  %v1817_v40 = vld [vmem:[%s4006_s6 + $0x10] sm:$0xff] }
 0xddc   : > { %v1818_v42 = vld [vmem:[%s4006_s6 + $0x18] sm:$0xff] }
 0xddd   : > { %v1680_v30 = vsel %vm334_vm1, %v1679_v8, -inf  ;;  %v1572_v33 = vmul.f32 -0.5, %v1564_v4 }
 0xdde   : > { %1681 = vmax.xlane.f32.xlu0 %v1680_v30  ;;  %v2885_v30 = vpack.c.bf16 %v1816_v12, %v1815_v37  ;;  %v1820_v37 = vld [vmem:[%s4006_s6 + $0x28] sm:$0xff] }
 0xde0   : > { %2886 = vmatpush3.bf16.msra.mxu0 %v2885_v30  ;;  %v1851_v30 = vld [vmem:[%s4006_s6 + $0x120] sm:$0xff] }
 0xe6b   : > { %v1682_v6 = vpop.xlane.xlu0 %1681 }
 0xe6c   : > { %v1683_v46 = vsub.f32 %v1679_v8, %v1682_v6 }
 0xe6e   : > { %v1684_v23 = vmul.f32 1.442695, %v1683_v46  ;;  %v1848_v46 = vld [vmem:[%s4006_s6 + $0x108] sm:$0xff] }
 0xe70   : > { %3060 = vpow2.f32 %v1684_v23  ;;  %v1833_v23 = vld [vmem:[%s4006_s6 + $0x90] sm:$0xff] }
 0xe7a   : > { %v3061_v38 = vpop.eup %3060 }
 0xe7b   : > { %v1686_v16 = vsel %vm334_vm1, %v3061_v38, 0.0 }
 0xe7c   : > { %1687 = vadd.xlane.f32.xlu1 %v1686_v16  ;;  %v1834_v16 = vld [vmem:[%s4006_s6 + $0x98] sm:$0xff] }
 0xf09   : > { %v1688_v39 = vpop.xlane.xlu1 %1687 }
 0xf0a   : > { %3062 = vrcp.f32 %v1688_v39 }
 0xf0b   : > { %3064 = vlog2.f32 %v1688_v39  ;;  %v2887_v39 = vpack.c.bf16 %v1834_v16, %v1833_v23  ;;  %v1837_v23 = vld [vmem:[%s4006_s6 + $0xb0] sm:$0xff] }
 0xf0c   : > { %v1869_v16 = vld [vmem:[%s4006_s6 + $0x1b0] sm:$0xff] }
 0xf0d   : > { %2888 = vmatprep.subr.bf16.mxu0 %v2887_v39  ;;  %v1821_v39 = vld [vmem:[%s4006_s6 + $0x30] sm:$0xff] }
 0xf14   : > { %v3063_v11 = vpop.eup %3062 }
 0xf15   : > { %v3065_v51 = vpop.eup %3064  ;;  %v1690_v21 = vmul.f32 %v3063_v11, %v3061_v38  ;;  %v1849_v11 = vld [vmem:[%s4006_s6 + $0x110] sm:$0xff] }
 0xf16   : > { %v1693_v26 = vmul.f32 0.6931472, %v3065_v51  ;;  %v2889_v51 = vpack.c.bf16 %v1818_v42, %v1817_v40  ;;  %v2927_v40 = vpack.c.bf16 %v1870_v14, %v1869_v16  ;;  %v1857_v14 = vld [vmem:[%s4006_s6 + $0x150] sm:$0xff] }
 0xf17   : > { %1691 = vst.msk [vmem:[#allocation3 + $0x6] sm:$0x1] %vm3465_vm2, %v1690_v21  ;;  %v1850_v21 = vld [vmem:[%s4006_s6 + $0x118] sm:$0xff] }
 0xf18   : > { %v1694_v28 = vadd.f32 %v1693_v26, %v1682_v6  ;;  %v1847_v6 = vld [vmem:[%s4006_s6 + $0x100] sm:$0xff]  ;;  %v2921_v26 = vpack.c.bf16 %v1850_v21, %v1849_v11  ;;  %2890 = vmatpush3.bf16.msra.mxu0 %v2889_v51  ;;  %v1853_v11 = vld [vmem:[%s4006_s6 + $0x130] sm:$0xff]  ;;  %v1854_v51 = vld [vmem:[%s4006_s6 + $0x138] sm:$0xff] }
 0xf19   : > { %v2917_v38 = vpack.c.bf16 %v1848_v46, %v1847_v6  ;;  %v1852_v6 = vld [vmem:[%s4006_s6 + $0x128] sm:$0xff]  ;;  %v2929_v21 = vpack.c.bf16 %v1854_v51, %v1853_v11  ;;  %v1875_v11 = vld [vmem:[%s4006_s6 + $0x1e0] sm:$0xff] }
 0xf1a   : > { %v1695_v45 = vsub.f32 %v1679_v8, %v1694_v28  ;;  %v2915_v8 = vpack.c.bf16 %v1864_v0, %v1863_v58  ;;  %v2891_v58 = vpack.c.bf16 %v1836_v52, %v1835_v53  ;;  %v1819_v0 = vld [vmem:[%s4006_s6 + $0x20] sm:$0xff]  ;;  %v2925_v46 = vpack.c.bf16 %v1852_v6, %v1851_v30  ;;  %v1824_v52 = vld [vmem:[%s4006_s6 + $0x48] sm:$0xff]  ;;  %v1873_v30 = vld [vmem:[%s4006_s6 + $0x1d0] sm:$0xff] }
 0xf1b   : > { %v1823_v53 = vld [vmem:[%s4006_s6 + $0x40] sm:$0xff] }
 0xf1c   : > { %v1696_v49 = vadd.f32 %v1695_v45, %v1572_v33  ;;  %2916 = vmatprep.subr.bf16.mxu1 %v2915_v8  ;;  %v2893_v8 = vpack.c.bf16 %v1820_v37, %v1819_v0  ;;  %2892 = vmatprep.subr.bf16.mxu0 %v2891_v58  ;;  %v2901_v58 = vpack.c.bf16 %v1824_v52, %v1823_v53  ;;  %v1856_v0 = vld [vmem:[%s4006_s6 + $0x148] sm:$0xff]  ;;  %v1845_v52 = vld [vmem:[%s4006_s6 + $0xf0] sm:$0xff] }
 0xf1d   : > { %2918 = vmatpush3.bf16.msra.mxu1 %v2917_v38  ;;  %v1838_v38 = vld [vmem:[%s4006_s6 + $0xb8] sm:$0xff]  ;;  %v1860_v53 = vld [vmem:[%s4006_s6 + $0x168] sm:$0xff] }
 0xf1e   : > { %v1697_v61 = vsel %vm334_vm1, %v1696_v49, -inf  ;;  %2920 = vmatprep.subr.bf16.mxu1 %v2919_v18  ;;  %2894 = vmatpush3.bf16.msra.mxu0 %v2893_v8  ;;  %v2895_v7 = vpack.c.bf16 %v1838_v38, %v1837_v23  ;;  %v1822_v18 = vld [vmem:[%s4006_s6 + $0x38] sm:$0xff]  ;;  %v1825_v23 = vld [vmem:[%s4006_s6 + $0x50] sm:$0xff] }
 0xf1f   : > { %1698 = vmax.xlane.f32.xlu0 %v1697_v61  ;;  %v2897_v42 = vpack.c.bf16 %v1822_v18, %v1821_v39  ;;  %v1842_v8 = vld [vmem:[%s4006_s6 + $0xd8] sm:$0xff] }
 0xf20   : > { %2896 = vmatprep.subr.bf16.mxu0 %v2895_v7  ;;  %v1826_v38 = vld [vmem:[%s4006_s6 + $0x58] sm:$0xff] }
 0xf21   : > { %2922 = vmatpush3.bf16.msra.mxu1 %v2921_v26  ;;  %v1839_v26 = vld [vmem:[%s4006_s6 + $0xc0] sm:$0xff]  ;;  %v2905_v7 = vpack.c.bf16 %v1826_v38, %v1825_v23  ;;  %v1858_v39 = vld [vmem:[%s4006_s6 + $0x158] sm:$0xff] }
 0xf22   : > { %2898 = vmatpush3.bf16.msra.mxu0 %v2897_v42  ;;  %v2937_v18 = vpack.c.bf16 %v1858_v39, %v1857_v14  ;;  %v1844_v42 = vld [vmem:[%s4006_s6 + $0xe8] sm:$0xff]  ;;  %v1862_v23 = vld [vmem:[%s4006_s6 + $0x178] sm:$0xff]  ;;  %v1927_v14 = vld [vmem:[%s4006_s6 + $0x380] sm:$0xff] }
 0xfac   : > { %v1699_v4 = vpop.xlane.xlu0 %1698 }
 0xfad   : > { %v1700_v28 = vsub.f32 %v1696_v49, %v1699_v4  ;;  %v1867_v49 = vld [vmem:[%s4006_s6 + $0x1a0] sm:$0xff]  ;;  %v1840_v4 = vld [vmem:[%s4006_s6 + $0xc8] sm:$0xff] }
 0xfae   : > { %v2923_v12 = vpack.c.bf16 %v1868_v5, %v1867_v49  ;;  %v1855_v5 = vld [vmem:[%s4006_s6 + $0x140] sm:$0xff] }
 0xfaf   : > { %v1701_v33 = vmul.f32 1.442695, %v1700_v28  ;;  %v1871_v28 = vld [vmem:[%s4006_s6 + $0x1c0] sm:$0xff]  ;;  %v2933_v37 = vpack.c.bf16 %v1856_v0, %v1855_v5  ;;  %v1877_v5 = vld [vmem:[%s4006_s6 + $0x1f0] sm:$0xff]  ;;  %v1878_v0 = vld [vmem:[%s4006_s6 + $0x1f8] sm:$0xff] }
 0xfb0   : > { %2924 = vmatprep.subr.bf16.mxu1 %v2923_v12  ;;  %v1841_v12 = vld [vmem:[%s4006_s6 + $0xd0] sm:$0xff] }
 0xfb1   : > { %3066 = vpow2.f32 %v1701_v33  ;;  %2926 = vmatpush3.bf16.msra.mxu1 %v2925_v46  ;;  %v2899_v33 = vpack.c.bf16 %v1840_v4, %v1839_v26  ;;  %v2903_v6 = vpack.c.bf16 %v1842_v8, %v1841_v12  ;;  %v1874_v46 = vld [vmem:[%s4006_s6 + $0x1d8] sm:$0xff]  ;;  %v1827_v26 = vld [vmem:[%s4006_s6 + $0x60] sm:$0xff]  ;;  %v1828_v4 = vld [vmem:[%s4006_s6 + $0x68] sm:$0xff]  ;;  %v2943_v12 = vpack.c.bf16 %v1878_v0, %v1877_v5 }
 0xfb2   : > { %2928 = vmatprep.subr.bf16.mxu1 %v2927_v40  ;;  %v2935_v16 = vpack.c.bf16 %v1874_v46, %v1873_v30  ;;  %v1843_v40 = vld [vmem:[%s4006_s6 + $0xe0] sm:$0xff]  ;;  %v1829_v8 = vld [vmem:[%s4006_s6 + $0x70] sm:$0xff]  ;;  %v1830_v30 = vld [vmem:[%s4006_s6 + $0x78] sm:$0xff] }
 0xfb3   : > { %2900 = vmatprep.subr.bf16.mxu0 %v2899_v33  ;;  %v2907_v51 = vpack.c.bf16 %v1844_v42, %v1843_v40  ;;  %v2909_v33 = vpack.c.bf16 %v1828_v4, %v1827_v26  ;;  %v2913_v46 = vpack.c.bf16 %v1830_v30, %v1829_v8  ;;  %v1897_v0 = vld [vmem:[%s4006_s6 + $0x290] sm:$0xff]  ;;  %v1898_v8 = vld [vmem:[%s4006_s6 + $0x298] sm:$0xff] }
 0xfb4   : > { %2902 = vmatpush3.bf16.msra.mxu0 %v2901_v58  ;;  %v1846_v58 = vld [vmem:[%s4006_s6 + $0xf8] sm:$0xff]  ;;  %v1929_v30 = vld [vmem:[%s4006_s6 + $0x390] sm:$0xff] }
 0xfb5   : > { %2930 = vmatpush3.bf16.msra.mxu1 %v2929_v21  ;;  %2904 = vmatprep.subr.bf16.mxu0 %v2903_v6  ;;  %v1876_v21 = vld [vmem:[%s4006_s6 + $0x1e8] sm:$0xff]  ;;  %v1861_v6 = vld [vmem:[%s4006_s6 + $0x170] sm:$0xff] }
 0xfb6   : > { %v2945_v38 = vpack.c.bf16 %v1862_v23, %v1861_v6  ;;  %v1930_v6 = vld [vmem:[%s4006_s6 + $0x398] sm:$0xff] }
 0xfb8   : > { %2906 = vmatpush3.bf16.msra.mxu0 %v2905_v7  ;;  %v1896_v7 = vld [vmem:[%s4006_s6 + $0x288] sm:$0xff] }
 0xfb9   : > { %2908 = vmatprep.subr.bf16.mxu0 %v2907_v51 }
 0xfbb   : > { %v3556_v45 = vpop.eup %3066 }
 0xfbc   : > { %v1703_v61 = vsel %vm334_vm1, %v3556_v45, 0.0  ;;  %2910 = vmatpush3.bf16.msra.mxu0 %v2909_v33 }
 0xfbd   : > { %1704 = vadd.xlane.f32.xlu1 %v1703_v61  ;;  %v1872_v61 = vld [vmem:[%s4006_s6 + $0x1c8] sm:$0xff] }
 0xfbe   : > { %v2931_v49 = vpack.c.bf16 %v1872_v61, %v1871_v28  ;;  %v2939_v28 = vpack.c.bf16 %v1876_v21, %v1875_v11  ;;  %v1859_v61 = vld [vmem:[%s4006_s6 + $0x160] sm:$0xff]  ;;  %v3718_v21 = vshrl.u32 %v1585_v9, 7  ;;  %v1880_v9 = vld [vmem:[%s4006_s6 + $0x208] sm:$0xff] }
 0xfc0   : > { %2932 = vmatprep.subr.bf16.mxu1 %v2931_v49  ;;  %v2941_v49 = vpack.c.bf16 %v1860_v53, %v1859_v61  ;;  %v1749_v26 = vsub.s32 1, %v3718_v21  ;;  %v1757_v4 = vsub.s32 3, %v3718_v21  ;;  %v1753_v33 = vsub.s32 2, %v3718_v21  ;;  %v1879_v61 = vld [vmem:[%s4006_s6 + $0x200] sm:$0xff] }
 0xfc1   : > { %2934 = vmatpush3.bf16.msra.mxu1 %v2933_v37  ;;  %v2911_v37 = vpack.c.bf16 %v1846_v58, %v1845_v52 }
 0xfc2   : > { %2936 = vmatprep.subr.bf16.mxu1 %v2935_v16  ;;  %v1895_v16 = vld [vmem:[%s4006_s6 + $0x280] sm:$0xff] }
 0xfc3   : > { %2912 = vmatprep.subr.bf16.mxu0 %v2911_v37  ;;  %v2947_v39 = vpack.c.bf16 %v1896_v7, %v1895_v16  ;;  %v2949_v37 = vpack.c.bf16 %v1880_v9, %v1879_v61  ;;  %v1881_v7 = vld [vmem:[%s4006_s6 + $0x210] sm:$0xff]  ;;  %v1915_v61 = vld [vmem:[%s4006_s6 + $0x320] sm:$0xff]  ;;  %v1916_v9 = vld [vmem:[%s4006_s6 + $0x328] sm:$0xff] }
 0xfc4   : > { %2914 = vmatpush3.bf16.msra.mxu0 %v2913_v46 }
 0xfc5   : > { %2938 = vmatpush3.bf16.msra.mxu1 %v2937_v18  ;;  %v1928_v18 = vld [vmem:[%s4006_s6 + $0x388] sm:$0xff]  ;;  %2948 = vmatprep.subr.bf16.mxu0 %v2947_v39  ;;  %v1899_v39 = vld [vmem:[%s4006_s6 + $0x2a0] sm:$0xff] }
 0xfc6   : > { %2940 = vmatprep.subr.bf16.mxu1 %v2939_v28  ;;  %v2979_v40 = vpack.c.bf16 %v1928_v18, %v1927_v14  ;;  %v1745_v28 = vsub.s32 0, %v3718_v21  ;;  %v1882_v14 = vld [vmem:[%s4006_s6 + $0x218] sm:$0xff] }
 0xfc9   : > { %2942 = vmatpush3.bf16.msra.mxu1 %v2941_v49 }
 0xfca   : > { %2944 = vmatprep.subr.bf16.mxu1 %v2943_v12 }
 0xfcd   : > { %2946 = vmatpush3.bf16.msra.mxu1 %v2945_v38 }
 0xfce   : > { %2980 = vmatprep.subr.bf16.mxu1 %v2979_v40 }
0x104a   : > { %v1705_v42 = vpop.xlane.xlu1 %1704 }
0x104b   : > { %3068 = vrcp.f32 %v1705_v42  ;;  %v1900_v42 = vld [vmem:[%s4006_s6 + $0x2a8] sm:$0xff] }
0x1055   : > { %v3069_v11 = vpop.eup %3068 }
0x1056   : > { %v1707_v51 = vmul.f32 %v3069_v11, %v3556_v45  ;;  %v1912_v45 = vld [vmem:[%s4006_s6 + $0x308] sm:$0xff]  ;;  %v1931_v11 = vld [vmem:[%s4006_s6 + $0x3a0] sm:$0xff] }
0x1057   : > { %v2981_v12 = vpack.c.bf16 %v1912_v45, %v1911_v32  ;;  %v2955_v32 = vpack.c.bf16 %v1900_v42, %v1899_v39  ;;  %v1936_v42 = vld [vmem:[%s4006_s6 + $0x3c8] sm:$0xff] }
0x1058   : > { %1708 = vst.msk [vmem:[#allocation3 + $0x7] sm:$0x1] %vm3465_vm2, %v1707_v51  ;;  %v1932_v51 = vld [vmem:[%s4006_s6 + $0x3a8] sm:$0xff] }
0x1059   : > { %v2987_v45 = vpack.c.bf16 %v1932_v51, %v1931_v11 }
0x105f   : > { %v3738_v53 = vld [vmem:[#allocation3] sm:$0xff] }
0x1060   : > { %v3741_v52 = vrot.slane %v3738_v53, %v1749_v26  ;;  %v3744_v49 = vrot.slane %v3738_v53, %v1757_v4  ;;  %v3747_v58 = vrot.slane %v3738_v53, %v1745_v28  ;;  %v3750_v5 = vrot.slane %v3738_v53, %v1753_v33  ;;  %v1884_v33 = vld [vmem:[%s4006_s6 + $0x228] sm:$0xff] }
0x1061   : > { %v2953_v26 = vpack.c.bf16 %v1882_v14, %v1881_v7  ;;  %v1917_v7 = vld [vmem:[%s4006_s6 + $0x330] sm:$0xff]  ;;  %v1918_v14 = vld [vmem:[%s4006_s6 + $0x338] sm:$0xff] }
0x1062   : > { %v1784_v46 = vmul.f32 %v3741_v52, %v3209_v29  ;;  %v1786_v23 = vmul.f32 %v3744_v49, %v3281_v59  ;;  %v1783_v38 = vmul.f32 %v3747_v58, %v3177_v15  ;;  %v1785_v16 = vmul.f32 %v3750_v5, %v3241_v43  ;;  %v1913_v29 = vld [vmem:[%s4006_s6 + $0x310] sm:$0xff]  ;;  %v1914_v59 = vld [vmem:[%s4006_s6 + $0x318] sm:$0xff] }
0x1063   : > { %v2951_v15 = vpack.c.bf16 %v1898_v8, %v1897_v0  ;;  %v2983_v43 = vpack.c.bf16 %v1930_v6, %v1929_v30  ;;  %v1792_v18 = vmul.f32 %v3741_v52, %v3207_v27  ;;  %v1794_v40 = vmul.f32 %v3744_v49, %v3279_v57  ;;  %v1883_v27 = vld [vmem:[%s4006_s6 + $0x220] sm:$0xff]  ;;  %v1933_v8 = vld [vmem:[%s4006_s6 + $0x3b0] sm:$0xff]  ;;  %v1934_v30 = vld [vmem:[%s4006_s6 + $0x3b8] sm:$0xff] }
0x1064   : > { %2007 = vmatprep.mubr.f32.mxu0 %v1784_v46  ;;  %2092 = vmatprep.mubr.f32.mxu1 %v1786_v23  ;;  %v2985_v4 = vpack.c.bf16 %v1914_v59, %v1913_v29  ;;  %v1791_v57 = vmul.f32 %v3747_v58, %v3175_v13  ;;  %v1793_v28 = vmul.f32 %v3750_v5, %v3239_v41  ;;  %v1901_v13 = vld [vmem:[%s4006_s6 + $0x2b0] sm:$0xff]  ;;  %v1765_v41 = vsub.s32 5, %v3718_v21 }
0x1065   : > { %2008 = vmatmul.mubr.f32.vlgmr.msra.gmra.mrb[24].mxu0 %v1783_v38  ;;  %2093 = vmatmul.mubr.f32.vlgmr.msra.gmra.mrb[24].mxu1 %v1785_v16  ;;  %v1800_v0 = vmul.f32 %v3741_v52, %v3219_v36  ;;  %v1773_v6 = vsub.s32 7, %v3718_v21  ;;  %v2957_v36 = vpack.c.bf16 %v1884_v33, %v1883_v27  ;;  %v2989_v46 = vpack.c.bf16 %v1916_v9, %v1915_v61  ;;  %v1886_v16 = vld [vmem:[%s4006_s6 + $0x238] sm:$0xff]  ;;  %v1905_v27 = vld [vmem:[%s4006_s6 + $0x2d0] sm:$0xff] }
0x1066   : > { %2950 = vmatpush3.bf16.msra.mxu0 %v2949_v37  ;;  %2982 = vmatpush3.bf16.msra.mxu1 %v2981_v12  ;;  %v1802_v37 = vmul.f32 %v3744_v49, %v3291_v3  ;;  %v1902_v12 = vld [vmem:[%s4006_s6 + $0x2b8] sm:$0xff]  ;;  %v1885_v3 = vld [vmem:[%s4006_s6 + $0x230] sm:$0xff]  ;;  %v1799_v23 = vmul.f32 %v3747_v58, %v3187_v22  ;;  %v1801_v38 = vmul.f32 %v3750_v5, %v3251_v50  ;;  %v1903_v50 = vld [vmem:[%s4006_s6 + $0x2c0] sm:$0xff] }
0x1067   : > { %2012 = vmatprep.mubr.f32.mxu0 %v1792_v18  ;;  %2097 = vmatprep.mubr.f32.mxu1 %v1794_v40  ;;  %v2959_v29 = vpack.c.bf16 %v1902_v12, %v1901_v13  ;;  %v2991_v59 = vpack.c.bf16 %v1934_v30, %v1933_v8  ;;  %v3851_v22 = vrot.slane %v3738_v53, %v1765_v41  ;;  %v1904_v18 = vld [vmem:[%s4006_s6 + $0x2c8] sm:$0xff]  ;;  %v1935_v40 = vld [vmem:[%s4006_s6 + $0x3c0] sm:$0xff] }
0x1068   : > { %2952 = vmatprep.subr.bf16.mxu0 %v2951_v15  ;;  %2984 = vmatprep.subr.bf16.mxu1 %v2983_v43  ;;  %v1808_v15 = vmul.f32 %v3741_v52, %v3217_v34  ;;  %v1810_v43 = vmul.f32 %v3744_v49, %v3289_v1  ;;  %v3861_v39 = vrot.slane %v3738_v53, %v1773_v6  ;;  %v1887_v1 = vld [vmem:[%s4006_s6 + $0x240] sm:$0xff]  ;;  %v1888_v49 = vld [vmem:[%s4006_s6 + $0x248] sm:$0xff] }
0x1069   : > { %2013 = vmatmul.mubr.f32.gmra.mrb[26].mxu0 %v1791_v57  ;;  %2098 = vmatmul.mubr.f32.gmra.mrb[26].mxu1 %v1793_v28  ;;  %v2961_v34 = vpack.c.bf16 %v1886_v16, %v1885_v3  ;;  %v2993_v52 = vpack.c.bf16 %v1918_v14, %v1917_v7  ;;  %v1807_v11 = vmul.f32 %v3747_v58, %v3185_v20  ;;  %v1906_v20 = vld [vmem:[%s4006_s6 + $0x2d8] sm:$0xff]  ;;  %v1939_v12 = vld [vmem:[%s4006_s6 + $0x3e0] sm:$0xff]  ;;  %v1940_v8 = vld [vmem:[%s4006_s6 + $0x3e8] sm:$0xff] }
0x106a   : > { %2954 = vmatpush3.bf16.msra.mxu0 %v2953_v26  ;;  %2986 = vmatpush3.bf16.msra.mxu1 %v2985_v4  ;;  %v1809_v51 = vmul.f32 %v3750_v5, %v3249_v48  ;;  %v1919_v26 = vld [vmem:[%s4006_s6 + $0x340] sm:$0xff]  ;;  %v1920_v4 = vld [vmem:[%s4006_s6 + $0x348] sm:$0xff]  ;;  %v2963_v57 = vpack.c.bf16 %v1904_v18, %v1903_v50  ;;  %v2995_v28 = vpack.c.bf16 %v1936_v42, %v1935_v40  ;;  %v1937_v48 = vld [vmem:[%s4006_s6 + $0x3d0] sm:$0xff] }
0x106b   : > { %2017 = vmatprep.mubr.f32.mxu0 %v1800_v0  ;;  %2102 = vmatprep.mubr.f32.mxu1 %v1802_v37  ;;  %v1938_v58 = vld [vmem:[%s4006_s6 + $0x3d8] sm:$0xff]  ;;  %v1788_v5 = vmul.f32 %v3851_v22, %v3342_v47  ;;  %v1790_v33 = vmul.f32 %v3861_v39, %v3445_v55  ;;  %v2965_v61 = vpack.c.bf16 %v1888_v49, %v1887_v1  ;;  %v1921_v47 = vld [vmem:[%s4006_s6 + $0x350] sm:$0xff]  ;;  %v1907_v0 = vld [vmem:[%s4006_s6 + $0x2e0] sm:$0xff]  ;;  %v1761_v1 = vsub.s32 4, %v3718_v21 }
0x106c   : > { %2956 = vmatprep.subr.bf16.mxu0 %v2955_v32  ;;  %2988 = vmatprep.subr.bf16.mxu1 %v2987_v45  ;;  %v2997_v9 = vpack.c.bf16 %v1920_v4, %v1919_v26  ;;  %v1889_v32 = vld [vmem:[%s4006_s6 + $0x250] sm:$0xff]  ;;  %v1890_v45 = vld [vmem:[%s4006_s6 + $0x258] sm:$0xff]  ;;  %v2967_v13 = vpack.c.bf16 %v1906_v20, %v1905_v27  ;;  %v2999_v41 = vpack.c.bf16 %v1938_v58, %v1937_v48  ;;  %v1908_v37 = vld [vmem:[%s4006_s6 + $0x2e8] sm:$0xff]  ;;  %v1769_v49 = vsub.s32 6, %v3718_v21 }
0x106d   : > { %2018 = vmatmul.mubr.f32.gmra.mrb[28].mxu0 %v1799_v23  ;;  %2103 = vmatmul.mubr.f32.gmra.mrb[28].mxu1 %v1801_v38  ;;  %v1922_v55 = vld [vmem:[%s4006_s6 + $0x358] sm:$0xff]  ;;  %v2969_v30 = vpack.c.bf16 %v1890_v45, %v1889_v32  ;;  %v2971_v3 = vpack.c.bf16 %v1908_v37, %v1907_v0  ;;  %v3003_v23 = vpack.c.bf16 %v1940_v8, %v1939_v12  ;;  %v1923_v38 = vld [vmem:[%s4006_s6 + $0x360] sm:$0xff]  ;;  %v1924_v16 = vld [vmem:[%s4006_s6 + $0x368] sm:$0xff] }
0x106e   : > { %2958 = vmatpush3.bf16.msra.mxu0 %v2957_v36  ;;  %2990 = vmatpush3.bf16.msra.mxu1 %v2989_v46  ;;  %v3001_v6 = vpack.c.bf16 %v1922_v55, %v1921_v47  ;;  %v1891_v36 = vld [vmem:[%s4006_s6 + $0x260] sm:$0xff]  ;;  %v1892_v46 = vld [vmem:[%s4006_s6 + $0x268] sm:$0xff]  ;;  %v1909_v7 = vld [vmem:[%s4006_s6 + $0x2f0] sm:$0xff]  ;;  %v1762_v26 = vrot.slane %v3738_v53, %v1761_v1  ;;  %v1770_v4 = vrot.slane %v3738_v53, %v1769_v49 }
0x106f   : > { %2022 = vmatprep.mubr.f32.mxu0 %v1808_v15  ;;  %2107 = vmatprep.mubr.f32.mxu1 %v1810_v43  ;;  %v1910_v14 = vld [vmem:[%s4006_s6 + $0x2f8] sm:$0xff]  ;;  %v2973_v50 = vpack.c.bf16 %v1892_v46, %v1891_v36  ;;  %v3005_v15 = vpack.c.bf16 %v1924_v16, %v1923_v38  ;;  %v1893_v43 = vld [vmem:[%s4006_s6 + $0x270] sm:$0xff]  ;;  %v1798_v21 = vmul.f32 %v3861_v39, %v3443_v54 }
0x1070   : > { %2960 = vmatprep.subr.bf16.mxu0 %v2959_v29  ;;  %2992 = vmatprep.subr.bf16.mxu1 %v2991_v59  ;;  %v1941_v29 = vld [vmem:[%s4006_s6 + $0x3f0] sm:$0xff]  ;;  %v1942_v59 = vld [vmem:[%s4006_s6 + $0x3f8] sm:$0xff]  ;;  %v2975_v18 = vpack.c.bf16 %v1910_v14, %v1909_v7  ;;  %v1787_v27 = vmul.f32 %v1762_v26, %v3318_v24  ;;  %v1795_v20 = vmul.f32 %v1762_v26, %v3316_v19 }
0x1071   : > { %2023 = vmatmul.mubr.f32.gmra.mrb[30].mxu0 %v1807_v11  ;;  %2108 = vmatmul.mubr.f32.gmra.mrb[30].mxu1 %v1809_v51  ;;  %v3007_v40 = vpack.c.bf16 %v1942_v59, %v1941_v29  ;;  %v1894_v42 = vld [vmem:[%s4006_s6 + $0x278] sm:$0xff]  ;;  %v1797_v53 = vmul.f32 %v1770_v4, %v3388_v2  ;;  %v1804_v48 = vmul.f32 %v3851_v22, %v3350_v60 }
0x1072   : > { %2962 = vmatpush3.bf16.msra.mxu0 %v2961_v34  ;;  %2994 = vmatpush3.bf16.msra.mxu1 %v2993_v52  ;;  %v1925_v34 = vld [vmem:[%s4006_s6 + $0x370] sm:$0xff]  ;;  %v1926_v52 = vld [vmem:[%s4006_s6 + $0x378] sm:$0xff]  ;;  %v2977_v11 = vpack.c.bf16 %v1894_v42, %v1893_v43  ;;  %v1806_v24 = vmul.f32 %v3861_v39, %v3453_v62  ;;  %v1812_v54 = vmul.f32 %v3851_v22, %v3348_v56 }
0x1073   : > { %2177 = vmatprep.mubr.f32.mxu0 %v1788_v5  ;;  %2262 = vmatprep.mubr.f32.mxu1 %v1790_v33  ;;  %v3009_v51 = vpack.c.bf16 %v1926_v52, %v1925_v34  ;;  %v1814_v19 = vmul.f32 %v3861_v39, %v3451_v63  ;;  %v1811_v60 = vmul.f32 %v1762_v26, %v3324_v31 }
0x1074   : > { %2964 = vmatprep.subr.bf16.mxu0 %v2963_v57  ;;  %2996 = vmatprep.subr.bf16.mxu1 %v2995_v28  ;;  %v1789_v57 = vmul.f32 %v1770_v4, %v3391_v10  ;;  %v1796_v28 = vmul.f32 %v3851_v22, %v3340_v44  ;;  %v1803_v44 = vmul.f32 %v1762_v26, %v3326_v35 }
0x1075   : > { %v1805_v10 = vmul.f32 %v1770_v4, %v3406_v25  ;;  %v1813_v2 = vmul.f32 %v1770_v4, %v3404_v17 }
0x1076   : > { %2966 = vmatpush3.bf16.msra.mxu0 %v2965_v61  ;;  %2998 = vmatpush3.bf16.msra.mxu1 %v2997_v9 }
0x1077   : > { %2968 = vmatprep.subr.bf16.mxu0 %v2967_v13  ;;  %3000 = vmatprep.subr.bf16.mxu1 %v2999_v41 }
0x107a   : > { %2970 = vmatpush3.bf16.msra.mxu0 %v2969_v30  ;;  %3002 = vmatpush3.bf16.msra.mxu1 %v3001_v6 }
0x107b   : > { %2972 = vmatprep.subr.bf16.mxu0 %v2971_v3  ;;  %3004 = vmatprep.subr.bf16.mxu1 %v3003_v23 }
0x107e   : > { %2974 = vmatpush3.bf16.msra.mxu0 %v2973_v50  ;;  %3006 = vmatpush3.bf16.msra.mxu1 %v3005_v15 }
0x107f   : > { %2976 = vmatprep.subr.bf16.mxu0 %v2975_v18  ;;  %3008 = vmatprep.subr.bf16.mxu1 %v3007_v40 }
0x1082   : > { %2978 = vmatpush3.bf16.msra.mxu0 %v2977_v11  ;;  %3010 = vmatpush3.bf16.msra.mxu1 %v3009_v51 }
0x1085   : > { %2178 = vmatmul.mubr.f32.vlgmr.msra.gmra.mrb[32].mxu0 %v1787_v27  ;;  %2263 = vmatmul.mubr.f32.vlgmr.msra.gmra.mrb[32].mxu1 %v1789_v57 }
0x1086   : > { %2182 = vmatprep.mubr.f32.mxu0 %v1796_v28  ;;  %2267 = vmatprep.mubr.f32.mxu1 %v1798_v21 }
0x1089   : > { %2183 = vmatmul.mubr.f32.gmra.mrb[34].mxu0 %v1795_v20  ;;  %2268 = vmatmul.mubr.f32.gmra.mrb[34].mxu1 %v1797_v53 }
0x108a   : > { %2187 = vmatprep.mubr.f32.mxu0 %v1804_v48  ;;  %2272 = vmatprep.mubr.f32.mxu1 %v1806_v24 }
0x108d   : > { %2188 = vmatmul.mubr.f32.gmra.mrb[36].mxu0 %v1803_v44  ;;  %2273 = vmatmul.mubr.f32.gmra.mrb[36].mxu1 %v1805_v10 }
0x108e   : > { %2192 = vmatprep.mubr.f32.mxu0 %v1812_v54  ;;  %2277 = vmatprep.mubr.f32.mxu1 %v1814_v19 }
0x1091   : > { %2193 = vmatmul.mubr.f32.gmra.mrb[38].mxu0 %v1811_v60  ;;  %2278 = vmatmul.mubr.f32.gmra.mrb[38].mxu1 %v1813_v2 }
0x1138   : > { %v2531_v62 = vpop.f32.mrb[24].mxu0  ;;  %v2575_v35 = vpop.f32.mrb[24].mxu1 }
0x1139   : > { %v2532_v58 = vpop.f32.mrb[25].mxu0  ;;  %v2576_v25 = vpop.f32.mrb[25].mxu1 }
0x113a   : > { %v2533_v5 = vadd.f32 %v2532_v58, %v2531_v62  ;;  %v2577_v33 = vadd.f32 %v2576_v25, %v2575_v35 }
0x113c   : > { %v2095_v56 = vadd.f32 %v2577_v33, %v2533_v5  ;;  %v2534_v22 = vpop.f32.mrb[26].mxu0  ;;  %v2578_v61 = vpop.f32.mrb[26].mxu1 }
0x113d   : > { %v2535_v63 = vpop.f32.mrb[27].mxu0  ;;  %v2579_v39 = vpop.f32.mrb[27].mxu1 }
0x113e   : > { %v2536_v9 = vadd.f32 %v2535_v63, %v2534_v22  ;;  %v2580_v32 = vadd.f32 %v2579_v39, %v2578_v61 }
0x1140   : > { %v2100_v45 = vadd.f32 %v2580_v32, %v2536_v9  ;;  %v2537_v13 = vpop.f32.mrb[28].mxu0  ;;  %v2581_v31 = vpop.f32.mrb[28].mxu1 }
0x1141   : > { %v2538_v41 = vpop.f32.mrb[29].mxu0  ;;  %v2582_v17 = vpop.f32.mrb[29].mxu1 }
0x1142   : > { %v2539_v47 = vadd.f32 %v2538_v41, %v2537_v13  ;;  %v2583_v55 = vadd.f32 %v2582_v17, %v2581_v31 }
0x1144   : > { %v2105_v0 = vadd.f32 %v2583_v55, %v2539_v47  ;;  %v2540_v37 = vpop.f32.mrb[30].mxu0  ;;  %v2584_v12 = vpop.f32.mrb[30].mxu1 }
0x1145   : > { %v2541_v8 = vpop.f32.mrb[31].mxu0  ;;  %v2585_v30 = vpop.f32.mrb[31].mxu1 }
0x1146   : > { %v2542_v6 = vadd.f32 %v2541_v8, %v2540_v37  ;;  %v2586_v36 = vadd.f32 %v2585_v30, %v2584_v12 }
0x1148   : > { %v2110_v46 = vadd.f32 %v2586_v36, %v2542_v6 }
0x1158   : > { %v2619_v3 = vpop.f32.mrb[32].mxu0  ;;  %v2663_v23 = vpop.f32.mrb[32].mxu1 }
0x1159   : > { %v2620_v38 = vpop.f32.mrb[33].mxu0  ;;  %v2664_v16 = vpop.f32.mrb[33].mxu1 }
0x115a   : > { %v2621_v7 = vadd.f32 %v2620_v38, %v2619_v3  ;;  %v2665_v14 = vadd.f32 %v2664_v16, %v2663_v23 }
0x115c   : > { %v2180_v29 = vadd.f32 %v2621_v7, %v2095_v56  ;;  %v2622_v59 = vpop.f32.mrb[34].mxu0  ;;  %v2666_v50 = vpop.f32.mrb[34].mxu1 }
0x115d   : > { %v2623_v15 = vpop.f32.mrb[35].mxu0  ;;  %v2667_v43 = vpop.f32.mrb[35].mxu1 }
0x115e   : > { %v2265_v18 = vadd.f32 %v2665_v14, %v2180_v29  ;;  %v2624_v40 = vadd.f32 %v2623_v15, %v2622_v59  ;;  %v2668_v42 = vadd.f32 %v2667_v43, %v2666_v50 }
0x1160   : > { %2284 = vst.msk [vmem:[%s332_s8] sm:$0xff] %vm2283_vm3, %v2265_v18  ;;  %v2185_v34 = vadd.f32 %v2624_v40, %v2100_v45  ;;  %v2625_v52 = vpop.f32.mrb[36].mxu0  ;;  %v2669_v1 = vpop.f32.mrb[36].mxu1 }
0x1161   : > { %v2626_v49 = vpop.f32.mrb[37].mxu0  ;;  %v2670_v11 = vpop.f32.mrb[37].mxu1 }
0x1162   : > { %v2270_v51 = vadd.f32 %v2668_v42, %v2185_v34  ;;  %v2627_v26 = vadd.f32 %v2626_v49, %v2625_v52  ;;  %v2671_v4 = vadd.f32 %v2670_v11, %v2669_v1 }
0x1164   : > { %2285 = vst.msk [vmem:[%s332_s8 + $0x8] sm:$0xff] %vm2283_vm3, %v2270_v51  ;;  %v2190_v27 = vadd.f32 %v2627_v26, %v2105_v0  ;;  %v2628_v57 = vpop.f32.mrb[38].mxu0  ;;  %v2672_v28 = vpop.f32.mrb[38].mxu1 }
0x1165   : > { %v2629_v21 = vpop.f32.mrb[39].mxu0  ;;  %v2673_v20 = vpop.f32.mrb[39].mxu1 }
0x1166   : > { %v2275_v53 = vadd.f32 %v2671_v4, %v2190_v27  ;;  %v2630_v48 = vadd.f32 %v2629_v21, %v2628_v57  ;;  %v2674_v24 = vadd.f32 %v2673_v20, %v2672_v28 }
0x1168   : > { %2286 = vst.msk [vmem:[%s332_s8 + $0x10] sm:$0xff] %vm2283_vm3, %v2275_v53  ;;  %v2195_v44 = vadd.f32 %v2630_v48, %v2110_v46 }
0x116a   : > { %v2280_v10 = vadd.f32 %v2674_v24, %v2195_v44 }
0x116c   : > { %2287 = vst.msk [vmem:[%s332_s8 + $0x18] sm:$0xff] %vm2283_vm3, %v2280_v10 }
0x116d PF: > { %s17_s24 = sadd.s32 1, %s3076_s24  }
0x116e   : > { %p14_p4 = scmp.ge.s32.totalorder %s17_s24, 4  }
0x1170   :  { %16 = sbr.rel (!%p14_p4) target bundleno = 1 (0x1), region = 87 }

</bundles_post_ra>
